<compile_context>
chip_gen: v6e
topology: v6e:2x2x1
jax: 0.10.0
libtpu: 0.0.40
codegen_flags: <defaults>
</compile_context>

<pallas_src>
import jax
import jax.numpy as jnp
import numpy as np
from jax.experimental import pallas as pl
from jax.experimental.pallas import tpu as pltpu


def make_fused_lstm_fc_kernel(num_layers, T, B, H):
    """Build the fused kernel.

    Kernel ref order (inputs, then outputs):
      x_ref                      : (T*B, D_in)  time-major, flattened (row = t*B + b)
      per layer l (l=0..L-1)     : w_ih_l (D_l, 4H), w_hh_l (H, 4H), b_l (1, 4H)
      w_fc (H, K), b_fc (1, K)
      out_ref                    : (B, K)
    """

    def kernel(*refs):
        x_ref = refs[0]
        layer_refs = refs[1:1 + 3 * num_layers]
        w_fc_ref = refs[1 + 3 * num_layers]
        b_fc_ref = refs[2 + 3 * num_layers]
        out_ref = refs[3 + 3 * num_layers]

        inp = x_ref[...]  # (T*B, D_in) value, resident on-chip
        h = None
        for l in range(num_layers):
            w_ih = layer_refs[3 * l][...]       # (D_l, 4H)
            w_hh = layer_refs[3 * l + 1][...]   # (H, 4H)
            b = layer_refs[3 * l + 2][...]      # (1, 4H)

            # Hoisted input projection: ONE matmul for all T timesteps of this layer.
            gx = jnp.dot(inp, w_ih, preferred_element_type=jnp.float32) + b  # (T*B, 4H)

            h = jnp.zeros((B, H), jnp.float32)
            c = jnp.zeros((B, H), jnp.float32)
            last_layer = (l == num_layers - 1)
            hs = []

            # T is small and static -> fully unrolled, all slices static.
            for t in range(T):
                gates = gx[t * B:(t + 1) * B, :] + jnp.dot(
                    h, w_hh, preferred_element_type=jnp.float32)  # (B, 4H)
                # PyTorch gate order: input, forget, cell(g), output
                i_g = jax.nn.sigmoid(gates[:, 0 * H:1 * H])
                f_g = jax.nn.sigmoid(gates[:, 1 * H:2 * H])
                g_g = jnp.tanh(gates[:, 2 * H:3 * H])
                o_g = jax.nn.sigmoid(gates[:, 3 * H:4 * H])
                c = f_g * c + i_g * g_g
                h = o_g * jnp.tanh(c)
                if not last_layer:
                    hs.append(h)

            if not last_layer:
                # (T*B, H) input for the next layer, kept on-chip (no HBM round-trip).
                inp = jnp.concatenate(hs, axis=0)

        # Final Linear on the last timestep's hidden state of the last layer
        # (== out[:, -1, :] in the PyTorch module).
        out_ref[...] = (
            jnp.dot(h, w_fc_ref[...], preferred_element_type=jnp.float32)
            + b_fc_ref[...]
        ).astype(out_ref.dtype)

    return kernel


def model_forward(x, params):
    """x: (B, T, input_size), batch_first like PyTorch nn.LSTM(batch_first=True)."""
    B, T, D_in = x.shape
    lstm_params = params["lstm"]
    w_fc, b_fc = params["fc"]
    num_layers = len(lstm_params)
    H = lstm_params[0][1].shape[0]
    K = w_fc.shape[1]

    # Time-major + flattened so each layer's input projection is a single matmul.
    x_flat = jnp.transpose(x, (1, 0, 2)).reshape(T * B, D_in).astype(jnp.float32)

    flat_weights = []
    for (w_ih, w_hh, b) in lstm_params:
        flat_weights += [w_ih, w_hh, b]

    kernel = make_fused_lstm_fc_kernel(num_layers, T, B, H)
    out = pl.pallas_call(
        kernel,
        out_shape=jax.ShapeDtypeStruct((B, K), jnp.float32),
    )(x_flat, *flat_weights, w_fc, b_fc)
    return out


def init_params(key, input_size, hidden_size, num_layers, num_keys):
    """Deterministic init, matching PyTorch parameter shapes (stored transposed)."""
    bound = 1.0 / np.sqrt(hidden_size)
    lstm_params = []
    d_in = input_size
    for _ in range(num_layers):
        key, k1, k2, k3, k4 = jax.random.split(key, 5)
        # PyTorch weight_ih: (4H, d_in), weight_hh: (4H, H); stored transposed for x @ W.
        w_ih = jax.random.uniform(k1, (d_in, 4 * hidden_size), jnp.float32, -bound, bound)
        w_hh = jax.random.uniform(k2, (hidden_size, 4 * hidden_size), jnp.float32, -bound, bound)
        b_ih = jax.random.uniform(k3, (4 * hidden_size,), jnp.float32, -bound, bound)
        b_hh = jax.random.uniform(k4, (4 * hidden_size,), jnp.float32, -bound, bound)
        b = (b_ih + b_hh).reshape(1, 4 * hidden_size)
        lstm_params.append((w_ih, w_hh, b))
        d_in = hidden_size

    key, k5, k6 = jax.random.split(key, 3)
    fc_bound = 1.0 / np.sqrt(hidden_size)
    w_fc = jax.random.uniform(k5, (hidden_size, num_keys), jnp.float32, -fc_bound, fc_bound)
    b_fc = jax.random.uniform(k6, (1, num_keys), jnp.float32, -fc_bound, fc_bound)
    return {"lstm": lstm_params, "fc": (w_fc, b_fc)}


def reference_forward(x, params):
    """Pure-JAX reference (same math) for correctness checking."""
    h_seq = jnp.transpose(x, (1, 0, 2)).astype(jnp.float32)  # (T, B, D)
    for (w_ih, w_hh, b) in params["lstm"]:
        H = w_hh.shape[0]
        B = h_seq.shape[1]

        def step(carry, x_t):
            h, c = carry
            gates = x_t @ w_ih + h @ w_hh + b
            i_g = jax.nn.sigmoid(gates[:, 0 * H:1 * H])
            f_g = jax.nn.sigmoid(gates[:, 1 * H:2 * H])
            g_g = jnp.tanh(gates[:, 2 * H:3 * H])
            o_g = jax.nn.sigmoid(gates[:, 3 * H:4 * H])
            c_new = f_g * c + i_g * g_g
            h_new = o_g * jnp.tanh(c_new)
            return (h_new, c_new), h_new

        init = (jnp.zeros((B, H), jnp.float32), jnp.zeros((B, H), jnp.float32))
        _, h_seq = jax.lax.scan(step, init, h_seq)
    w_fc, b_fc = params["fc"]
    return h_seq[-1] @ w_fc + b_fc


if __name__ == "__main__":
    # Small shapes consistent with the module's forward.
    B, T = 2, 8
    input_size, hidden_size, num_layers, num_keys = 16, 32, 2, 16

    key = jax.random.PRNGKey(0)
    key, kx = jax.random.split(key)
    x = jax.random.normal(kx, (B, T, input_size), jnp.float32)

    params = init_params(key, input_size, hidden_size, num_layers, num_keys)

    out = model_forward(x, params)
    out = jax.block_until_ready(out)

    ref = reference_forward(x, params)
    assert out.shape == (B, num_keys)
    np.testing.assert_allclose(np.asarray(out), np.asarray(ref), atol=1e-4, rtol=1e-4)

    print("KERNEL_OK")
</pallas_src>

<mosaic_0001>
module attributes {stable_mosaic.version = 11 : i64} {
  func.func @kernel(%arg0: memref<16x16xf32, #tpu.memory_space<vmem>>, %arg1: memref<16x128xf32, #tpu.memory_space<vmem>>, %arg2: memref<32x128xf32, #tpu.memory_space<vmem>>, %arg3: memref<1x128xf32, #tpu.memory_space<vmem>>, %arg4: memref<32x128xf32, #tpu.memory_space<vmem>>, %arg5: memref<32x128xf32, #tpu.memory_space<vmem>>, %arg6: memref<1x128xf32, #tpu.memory_space<vmem>>, %arg7: memref<32x16xf32, #tpu.memory_space<vmem>>, %arg8: memref<1x16xf32, #tpu.memory_space<vmem>>, %arg9: memref<2x16xf32, #tpu.memory_space<vmem>>) attributes {dimension_semantics = [], scalar_prefetch = 0 : i64, scratch_operands = 0 : i64, tpu.core_type = #tpu.core_type<tc>} {
    %c0 = arith.constant 0 : index
    %c0_0 = arith.constant 0 : index
    %0 = vector.load %arg0[%c0, %c0_0] : memref<16x16xf32, #tpu.memory_space<vmem>>, vector<16x16xf32>
    %c0_1 = arith.constant 0 : index
    %c0_2 = arith.constant 0 : index
    %1 = vector.load %arg1[%c0_1, %c0_2] : memref<16x128xf32, #tpu.memory_space<vmem>>, vector<16x128xf32>
    %c0_3 = arith.constant 0 : index
    %c0_4 = arith.constant 0 : index
    %2 = vector.load %arg2[%c0_3, %c0_4] : memref<32x128xf32, #tpu.memory_space<vmem>>, vector<32x128xf32>
    %c0_5 = arith.constant 0 : index
    %c0_6 = arith.constant 0 : index
    %3 = vector.load %arg3[%c0_5, %c0_6] : memref<1x128xf32, #tpu.memory_space<vmem>>, vector<1x128xf32>
    %cst = arith.constant dense<0.000000e+00> : vector<16x128xf32>
    %4 = tpu.matmul %0, %1, %cst {dimension_numbers = #tpu.dot_dimension_numbers<[1], [0], [0], [1], [0, 0, 1, 1], [], []>} : vector<16x16xf32>, vector<16x128xf32>, vector<16x128xf32> -> vector<16x128xf32>
    %5 = vector.broadcast %3 : vector<1x128xf32> to vector<16x128xf32>
    %6 = arith.addf %4, %5 : vector<16x128xf32>
    %cst_7 = arith.constant 0.000000e+00 : f32
    %7 = vector.broadcast %cst_7 : f32 to vector<2x32xf32>
    %cst_8 = arith.constant 0.000000e+00 : f32
    %8 = vector.broadcast %cst_8 : f32 to vector<2x32xf32>
    %9 = vector.extract_strided_slice %6 {offsets = [0, 0], sizes = [2, 128], strides = [1, 1]} : vector<16x128xf32> to vector<2x128xf32>
    %cst_9 = arith.constant dense<0.000000e+00> : vector<2x128xf32>
    %10 = tpu.matmul %7, %2, %cst_9 {dimension_numbers = #tpu.dot_dimension_numbers<[1], [0], [0], [1], [0, 0, 1, 1], [], []>} : vector<2x32xf32>, vector<32x128xf32>, vector<2x128xf32> -> vector<2x128xf32>
    %11 = arith.addf %9, %10 : vector<2x128xf32>
    %12 = vector.extract_strided_slice %11 {offsets = [0, 0], sizes = [2, 32], strides = [1, 1]} : vector<2x128xf32> to vector<2x32xf32>
    %13 = arith.negf %12 : vector<2x32xf32>
    %14 = math.exp %13 : vector<2x32xf32>
    %cst_10 = arith.constant 1.000000e+00 : f32
    %15 = vector.broadcast %cst_10 : f32 to vector<2x32xf32>
    %16 = arith.addf %15, %14 : vector<2x32xf32>
    %17 = arith.divf %15, %16 : vector<2x32xf32>
    %18 = vector.extract_strided_slice %11 {offsets = [0, 32], sizes = [2, 32], strides = [1, 1]} : vector<2x128xf32> to vector<2x32xf32>
    %19 = arith.negf %18 : vector<2x32xf32>
    %20 = math.exp %19 : vector<2x32xf32>
    %cst_11 = arith.constant 1.000000e+00 : f32
    %21 = vector.broadcast %cst_11 : f32 to vector<2x32xf32>
    %22 = arith.addf %21, %20 : vector<2x32xf32>
    %23 = arith.divf %21, %22 : vector<2x32xf32>
    %24 = vector.extract_strided_slice %11 {offsets = [0, 64], sizes = [2, 32], strides = [1, 1]} : vector<2x128xf32> to vector<2x32xf32>
    %25 = math.tanh %24 : vector<2x32xf32>
    %26 = vector.extract_strided_slice %11 {offsets = [0, 96], sizes = [2, 32], strides = [1, 1]} : vector<2x128xf32> to vector<2x32xf32>
    %27 = arith.negf %26 : vector<2x32xf32>
    %28 = math.exp %27 : vector<2x32xf32>
    %cst_12 = arith.constant 1.000000e+00 : f32
    %29 = vector.broadcast %cst_12 : f32 to vector<2x32xf32>
    %30 = arith.addf %29, %28 : vector<2x32xf32>
    %31 = arith.divf %29, %30 : vector<2x32xf32>
    %32 = arith.mulf %23, %8 : vector<2x32xf32>
    %33 = arith.mulf %17, %25 : vector<2x32xf32>
    %34 = arith.addf %32, %33 : vector<2x32xf32>
    %35 = math.tanh %34 : vector<2x32xf32>
    %36 = arith.mulf %31, %35 : vector<2x32xf32>
    %37 = vector.extract_strided_slice %6 {offsets = [2, 0], sizes = [2, 128], strides = [1, 1]} : vector<16x128xf32> to vector<2x128xf32>
    %cst_13 = arith.constant dense<0.000000e+00> : vector<2x128xf32>
    %38 = tpu.matmul %36, %2, %cst_13 {dimension_numbers = #tpu.dot_dimension_numbers<[1], [0], [0], [1], [0, 0, 1, 1], [], []>} : vector<2x32xf32>, vector<32x128xf32>, vector<2x128xf32> -> vector<2x128xf32>
    %39 = arith.addf %37, %38 : vector<2x128xf32>
    %40 = vector.extract_strided_slice %39 {offsets = [0, 0], sizes = [2, 32], strides = [1, 1]} : vector<2x128xf32> to vector<2x32xf32>
    %41 = arith.negf %40 : vector<2x32xf32>
    %42 = math.exp %41 : vector<2x32xf32>
    %cst_14 = arith.constant 1.000000e+00 : f32
    %43 = vector.broadcast %cst_14 : f32 to vector<2x32xf32>
    %44 = arith.addf %43, %42 : vector<2x32xf32>
    %45 = arith.divf %43, %44 : vector<2x32xf32>
    %46 = vector.extract_strided_slice %39 {offsets = [0, 32], sizes = [2, 32], strides = [1, 1]} : vector<2x128xf32> to vector<2x32xf32>
    %47 = arith.negf %46 : vector<2x32xf32>
    %48 = math.exp %47 : vector<2x32xf32>
    %cst_15 = arith.constant 1.000000e+00 : f32
    %49 = vector.broadcast %cst_15 : f32 to vector<2x32xf32>
    %50 = arith.addf %49, %48 : vector<2x32xf32>
    %51 = arith.divf %49, %50 : vector<2x32xf32>
    %52 = vector.extract_strided_slice %39 {offsets = [0, 64], sizes = [2, 32], strides = [1, 1]} : vector<2x128xf32> to vector<2x32xf32>
    %53 = math.tanh %52 : vector<2x32xf32>
    %54 = vector.extract_strided_slice %39 {offsets = [0, 96], sizes = [2, 32], strides = [1, 1]} : vector<2x128xf32> to vector<2x32xf32>
    %55 = arith.negf %54 : vector<2x32xf32>
    %56 = math.exp %55 : vector<2x32xf32>
    %cst_16 = arith.constant 1.000000e+00 : f32
    %57 = vector.broadcast %cst_16 : f32 to vector<2x32xf32>
    %58 = arith.addf %57, %56 : vector<2x32xf32>
    %59 = arith.divf %57, %58 : vector<2x32xf32>
    %60 = arith.mulf %51, %34 : vector<2x32xf32>
    %61 = arith.mulf %45, %53 : vector<2x32xf32>
    %62 = arith.addf %60, %61 : vector<2x32xf32>
    %63 = math.tanh %62 : vector<2x32xf32>
    %64 = arith.mulf %59, %63 : vector<2x32xf32>
    %65 = vector.extract_strided_slice %6 {offsets = [4, 0], sizes = [2, 128], strides = [1, 1]} : vector<16x128xf32> to vector<2x128xf32>
    %cst_17 = arith.constant dense<0.000000e+00> : vector<2x128xf32>
    %66 = tpu.matmul %64, %2, %cst_17 {dimension_numbers = #tpu.dot_dimension_numbers<[1], [0], [0], [1], [0, 0, 1, 1], [], []>} : vector<2x32xf32>, vector<32x128xf32>, vector<2x128xf32> -> vector<2x128xf32>
    %67 = arith.addf %65, %66 : vector<2x128xf32>
    %68 = vector.extract_strided_slice %67 {offsets = [0, 0], sizes = [2, 32], strides = [1, 1]} : vector<2x128xf32> to vector<2x32xf32>
    %69 = arith.negf %68 : vector<2x32xf32>
    %70 = math.exp %69 : vector<2x32xf32>
    %cst_18 = arith.constant 1.000000e+00 : f32
    %71 = vector.broadcast %cst_18 : f32 to vector<2x32xf32>
    %72 = arith.addf %71, %70 : vector<2x32xf32>
    %73 = arith.divf %71, %72 : vector<2x32xf32>
    %74 = vector.extract_strided_slice %67 {offsets = [0, 32], sizes = [2, 32], strides = [1, 1]} : vector<2x128xf32> to vector<2x32xf32>
    %75 = arith.negf %74 : vector<2x32xf32>
    %76 = math.exp %75 : vector<2x32xf32>
    %cst_19 = arith.constant 1.000000e+00 : f32
    %77 = vector.broadcast %cst_19 : f32 to vector<2x32xf32>
    %78 = arith.addf %77, %76 : vector<2x32xf32>
    %79 = arith.divf %77, %78 : vector<2x32xf32>
    %80 = vector.extract_strided_slice %67 {offsets = [0, 64], sizes = [2, 32], strides = [1, 1]} : vector<2x128xf32> to vector<2x32xf32>
    %81 = math.tanh %80 : vector<2x32xf32>
    %82 = vector.extract_strided_slice %67 {offsets = [0, 96], sizes = [2, 32], strides = [1, 1]} : vector<2x128xf32> to vector<2x32xf32>
    %83 = arith.negf %82 : vector<2x32xf32>
    %84 = math.exp %83 : vector<2x32xf32>
    %cst_20 = arith.constant 1.000000e+00 : f32
    %85 = vector.broadcast %cst_20 : f32 to vector<2x32xf32>
    %86 = arith.addf %85, %84 : vector<2x32xf32>
    %87 = arith.divf %85, %86 : vector<2x32xf32>
    %88 = arith.mulf %79, %62 : vector<2x32xf32>
    %89 = arith.mulf %73, %81 : vector<2x32xf32>
    %90 = arith.addf %88, %89 : vector<2x32xf32>
    %91 = math.tanh %90 : vector<2x32xf32>
    %92 = arith.mulf %87, %91 : vector<2x32xf32>
    %93 = vector.extract_strided_slice %6 {offsets = [6, 0], sizes = [2, 128], strides = [1, 1]} : vector<16x128xf32> to vector<2x128xf32>
    %cst_21 = arith.constant dense<0.000000e+00> : vector<2x128xf32>
    %94 = tpu.matmul %92, %2, %cst_21 {dimension_numbers = #tpu.dot_dimension_numbers<[1], [0], [0], [1], [0, 0, 1, 1], [], []>} : vector<2x32xf32>, vector<32x128xf32>, vector<2x128xf32> -> vector<2x128xf32>
    %95 = arith.addf %93, %94 : vector<2x128xf32>
    %96 = vector.extract_strided_slice %95 {offsets = [0, 0], sizes = [2, 32], strides = [1, 1]} : vector<2x128xf32> to vector<2x32xf32>
    %97 = arith.negf %96 : vector<2x32xf32>
    %98 = math.exp %97 : vector<2x32xf32>
    %cst_22 = arith.constant 1.000000e+00 : f32
    %99 = vector.broadcast %cst_22 : f32 to vector<2x32xf32>
    %100 = arith.addf %99, %98 : vector<2x32xf32>
    %101 = arith.divf %99, %100 : vector<2x32xf32>
    %102 = vector.extract_strided_slice %95 {offsets = [0, 32], sizes = [2, 32], strides = [1, 1]} : vector<2x128xf32> to vector<2x32xf32>
    %103 = arith.negf %102 : vector<2x32xf32>
    %104 = math.exp %103 : vector<2x32xf32>
    %cst_23 = arith.constant 1.000000e+00 : f32
    %105 = vector.broadcast %cst_23 : f32 to vector<2x32xf32>
    %106 = arith.addf %105, %104 : vector<2x32xf32>
    %107 = arith.divf %105, %106 : vector<2x32xf32>
    %108 = vector.extract_strided_slice %95 {offsets = [0, 64], sizes = [2, 32], strides = [1, 1]} : vector<2x128xf32> to vector<2x32xf32>
    %109 = math.tanh %108 : vector<2x32xf32>
    %110 = vector.extract_strided_slice %95 {offsets = [0, 96], sizes = [2, 32], strides = [1, 1]} : vector<2x128xf32> to vector<2x32xf32>
    %111 = arith.negf %110 : vector<2x32xf32>
    %112 = math.exp %111 : vector<2x32xf32>
    %cst_24 = arith.constant 1.000000e+00 : f32
    %113 = vector.broadcast %cst_24 : f32 to vector<2x32xf32>
    %114 = arith.addf %113, %112 : vector<2x32xf32>
    %115 = arith.divf %113, %114 : vector<2x32xf32>
    %116 = arith.mulf %107, %90 : vector<2x32xf32>
    %117 = arith.mulf %101, %109 : vector<2x32xf32>
    %118 = arith.addf %116, %117 : vector<2x32xf32>
    %119 = math.tanh %118 : vector<2x32xf32>
    %120 = arith.mulf %115, %119 : vector<2x32xf32>
    %121 = vector.extract_strided_slice %6 {offsets = [8, 0], sizes = [2, 128], strides = [1, 1]} : vector<16x128xf32> to vector<2x128xf32>
    %cst_25 = arith.constant dense<0.000000e+00> : vector<2x128xf32>
    %122 = tpu.matmul %120, %2, %cst_25 {dimension_numbers = #tpu.dot_dimension_numbers<[1], [0], [0], [1], [0, 0, 1, 1], [], []>} : vector<2x32xf32>, vector<32x128xf32>, vector<2x128xf32> -> vector<2x128xf32>
    %123 = arith.addf %121, %122 : vector<2x128xf32>
    %124 = vector.extract_strided_slice %123 {offsets = [0, 0], sizes = [2, 32], strides = [1, 1]} : vector<2x128xf32> to vector<2x32xf32>
    %125 = arith.negf %124 : vector<2x32xf32>
    %126 = math.exp %125 : vector<2x32xf32>
    %cst_26 = arith.constant 1.000000e+00 : f32
    %127 = vector.broadcast %cst_26 : f32 to vector<2x32xf32>
    %128 = arith.addf %127, %126 : vector<2x32xf32>
    %129 = arith.divf %127, %128 : vector<2x32xf32>
    %130 = vector.extract_strided_slice %123 {offsets = [0, 32], sizes = [2, 32], strides = [1, 1]} : vector<2x128xf32> to vector<2x32xf32>
    %131 = arith.negf %130 : vector<2x32xf32>
    %132 = math.exp %131 : vector<2x32xf32>
    %cst_27 = arith.constant 1.000000e+00 : f32
    %133 = vector.broadcast %cst_27 : f32 to vector<2x32xf32>
    %134 = arith.addf %133, %132 : vector<2x32xf32>
    %135 = arith.divf %133, %134 : vector<2x32xf32>
    %136 = vector.extract_strided_slice %123 {offsets = [0, 64], sizes = [2, 32], strides = [1, 1]} : vector<2x128xf32> to vector<2x32xf32>
    %137 = math.tanh %136 : vector<2x32xf32>
    %138 = vector.extract_strided_slice %123 {offsets = [0, 96], sizes = [2, 32], strides = [1, 1]} : vector<2x128xf32> to vector<2x32xf32>
    %139 = arith.negf %138 : vector<2x32xf32>
    %140 = math.exp %139 : vector<2x32xf32>
    %cst_28 = arith.constant 1.000000e+00 : f32
    %141 = vector.broadcast %cst_28 : f32 to vector<2x32xf32>
    %142 = arith.addf %141, %140 : vector<2x32xf32>
    %143 = arith.divf %141, %142 : vector<2x32xf32>
    %144 = arith.mulf %135, %118 : vector<2x32xf32>
    %145 = arith.mulf %129, %137 : vector<2x32xf32>
    %146 = arith.addf %144, %145 : vector<2x32xf32>
    %147 = math.tanh %146 : vector<2x32xf32>
    %148 = arith.mulf %143, %147 : vector<2x32xf32>
    %149 = vector.extract_strided_slice %6 {offsets = [10, 0], sizes = [2, 128], strides = [1, 1]} : vector<16x128xf32> to vector<2x128xf32>
    %cst_29 = arith.constant dense<0.000000e+00> : vector<2x128xf32>
    %150 = tpu.matmul %148, %2, %cst_29 {dimension_numbers = #tpu.dot_dimension_numbers<[1], [0], [0], [1], [0, 0, 1, 1], [], []>} : vector<2x32xf32>, vector<32x128xf32>, vector<2x128xf32> -> vector<2x128xf32>
    %151 = arith.addf %149, %150 : vector<2x128xf32>
    %152 = vector.extract_strided_slice %151 {offsets = [0, 0], sizes = [2, 32], strides = [1, 1]} : vector<2x128xf32> to vector<2x32xf32>
    %153 = arith.negf %152 : vector<2x32xf32>
    %154 = math.exp %153 : vector<2x32xf32>
    %cst_30 = arith.constant 1.000000e+00 : f32
    %155 = vector.broadcast %cst_30 : f32 to vector<2x32xf32>
    %156 = arith.addf %155, %154 : vector<2x32xf32>
    %157 = arith.divf %155, %156 : vector<2x32xf32>
    %158 = vector.extract_strided_slice %151 {offsets = [0, 32], sizes = [2, 32], strides = [1, 1]} : vector<2x128xf32> to vector<2x32xf32>
    %159 = arith.negf %158 : vector<2x32xf32>
    %160 = math.exp %159 : vector<2x32xf32>
    %cst_31 = arith.constant 1.000000e+00 : f32
    %161 = vector.broadcast %cst_31 : f32 to vector<2x32xf32>
    %162 = arith.addf %161, %160 : vector<2x32xf32>
    %163 = arith.divf %161, %162 : vector<2x32xf32>
    %164 = vector.extract_strided_slice %151 {offsets = [0, 64], sizes = [2, 32], strides = [1, 1]} : vector<2x128xf32> to vector<2x32xf32>
    %165 = math.tanh %164 : vector<2x32xf32>
    %166 = vector.extract_strided_slice %151 {offsets = [0, 96], sizes = [2, 32], strides = [1, 1]} : vector<2x128xf32> to vector<2x32xf32>
    %167 = arith.negf %166 : vector<2x32xf32>
    %168 = math.exp %167 : vector<2x32xf32>
    %cst_32 = arith.constant 1.000000e+00 : f32
    %169 = vector.broadcast %cst_32 : f32 to vector<2x32xf32>
    %170 = arith.addf %169, %168 : vector<2x32xf32>
    %171 = arith.divf %169, %170 : vector<2x32xf32>
    %172 = arith.mulf %163, %146 : vector<2x32xf32>
    %173 = arith.mulf %157, %165 : vector<2x32xf32>
    %174 = arith.addf %172, %173 : vector<2x32xf32>
    %175 = math.tanh %174 : vector<2x32xf32>
    %176 = arith.mulf %171, %175 : vector<2x32xf32>
    %177 = vector.extract_strided_slice %6 {offsets = [12, 0], sizes = [2, 128], strides = [1, 1]} : vector<16x128xf32> to vector<2x128xf32>
    %cst_33 = arith.constant dense<0.000000e+00> : vector<2x128xf32>
    %178 = tpu.matmul %176, %2, %cst_33 {dimension_numbers = #tpu.dot_dimension_numbers<[1], [0], [0], [1], [0, 0, 1, 1], [], []>} : vector<2x32xf32>, vector<32x128xf32>, vector<2x128xf32> -> vector<2x128xf32>
    %179 = arith.addf %177, %178 : vector<2x128xf32>
    %180 = vector.extract_strided_slice %179 {offsets = [0, 0], sizes = [2, 32], strides = [1, 1]} : vector<2x128xf32> to vector<2x32xf32>
    %181 = arith.negf %180 : vector<2x32xf32>
    %182 = math.exp %181 : vector<2x32xf32>
    %cst_34 = arith.constant 1.000000e+00 : f32
    %183 = vector.broadcast %cst_34 : f32 to vector<2x32xf32>
    %184 = arith.addf %183, %182 : vector<2x32xf32>
    %185 = arith.divf %183, %184 : vector<2x32xf32>
    %186 = vector.extract_strided_slice %179 {offsets = [0, 32], sizes = [2, 32], strides = [1, 1]} : vector<2x128xf32> to vector<2x32xf32>
    %187 = arith.negf %186 : vector<2x32xf32>
    %188 = math.exp %187 : vector<2x32xf32>
    %cst_35 = arith.constant 1.000000e+00 : f32
    %189 = vector.broadcast %cst_35 : f32 to vector<2x32xf32>
    %190 = arith.addf %189, %188 : vector<2x32xf32>
    %191 = arith.divf %189, %190 : vector<2x32xf32>
    %192 = vector.extract_strided_slice %179 {offsets = [0, 64], sizes = [2, 32], strides = [1, 1]} : vector<2x128xf32> to vector<2x32xf32>
    %193 = math.tanh %192 : vector<2x32xf32>
    %194 = vector.extract_strided_slice %179 {offsets = [0, 96], sizes = [2, 32], strides = [1, 1]} : vector<2x128xf32> to vector<2x32xf32>
    %195 = arith.negf %194 : vector<2x32xf32>
    %196 = math.exp %195 : vector<2x32xf32>
    %cst_36 = arith.constant 1.000000e+00 : f32
    %197 = vector.broadcast %cst_36 : f32 to vector<2x32xf32>
    %198 = arith.addf %197, %196 : vector<2x32xf32>
    %199 = arith.divf %197, %198 : vector<2x32xf32>
    %200 = arith.mulf %191, %174 : vector<2x32xf32>
    %201 = arith.mulf %185, %193 : vector<2x32xf32>
    %202 = arith.addf %200, %201 : vector<2x32xf32>
    %203 = math.tanh %202 : vector<2x32xf32>
    %204 = arith.mulf %199, %203 : vector<2x32xf32>
    %205 = vector.extract_strided_slice %6 {offsets = [14, 0], sizes = [2, 128], strides = [1, 1]} : vector<16x128xf32> to vector<2x128xf32>
    %cst_37 = arith.constant dense<0.000000e+00> : vector<2x128xf32>
    %206 = tpu.matmul %204, %2, %cst_37 {dimension_numbers = #tpu.dot_dimension_numbers<[1], [0], [0], [1], [0, 0, 1, 1], [], []>} : vector<2x32xf32>, vector<32x128xf32>, vector<2x128xf32> -> vector<2x128xf32>
    %207 = arith.addf %205, %206 : vector<2x128xf32>
    %208 = vector.extract_strided_slice %207 {offsets = [0, 0], sizes = [2, 32], strides = [1, 1]} : vector<2x128xf32> to vector<2x32xf32>
    %209 = arith.negf %208 : vector<2x32xf32>
    %210 = math.exp %209 : vector<2x32xf32>
    %cst_38 = arith.constant 1.000000e+00 : f32
    %211 = vector.broadcast %cst_38 : f32 to vector<2x32xf32>
    %212 = arith.addf %211, %210 : vector<2x32xf32>
    %213 = arith.divf %211, %212 : vector<2x32xf32>
    %214 = vector.extract_strided_slice %207 {offsets = [0, 32], sizes = [2, 32], strides = [1, 1]} : vector<2x128xf32> to vector<2x32xf32>
    %215 = arith.negf %214 : vector<2x32xf32>
    %216 = math.exp %215 : vector<2x32xf32>
    %cst_39 = arith.constant 1.000000e+00 : f32
    %217 = vector.broadcast %cst_39 : f32 to vector<2x32xf32>
    %218 = arith.addf %217, %216 : vector<2x32xf32>
    %219 = arith.divf %217, %218 : vector<2x32xf32>
    %220 = vector.extract_strided_slice %207 {offsets = [0, 64], sizes = [2, 32], strides = [1, 1]} : vector<2x128xf32> to vector<2x32xf32>
    %221 = math.tanh %220 : vector<2x32xf32>
    %222 = vector.extract_strided_slice %207 {offsets = [0, 96], sizes = [2, 32], strides = [1, 1]} : vector<2x128xf32> to vector<2x32xf32>
    %223 = arith.negf %222 : vector<2x32xf32>
    %224 = math.exp %223 : vector<2x32xf32>
    %cst_40 = arith.constant 1.000000e+00 : f32
    %225 = vector.broadcast %cst_40 : f32 to vector<2x32xf32>
    %226 = arith.addf %225, %224 : vector<2x32xf32>
    %227 = arith.divf %225, %226 : vector<2x32xf32>
    %228 = arith.mulf %219, %202 : vector<2x32xf32>
    %229 = arith.mulf %213, %221 : vector<2x32xf32>
    %230 = arith.addf %228, %229 : vector<2x32xf32>
    %231 = math.tanh %230 : vector<2x32xf32>
    %232 = arith.mulf %227, %231 : vector<2x32xf32>
    %233 = tpu.concatenate %36, %64, %92, %120, %148, %176, %204, %232 in 0 : vector<2x32xf32>, vector<2x32xf32>, vector<2x32xf32>, vector<2x32xf32>, vector<2x32xf32>, vector<2x32xf32>, vector<2x32xf32>, vector<2x32xf32> -> vector<16x32xf32>
    %c0_41 = arith.constant 0 : index
    %c0_42 = arith.constant 0 : index
    %234 = vector.load %arg4[%c0_41, %c0_42] : memref<32x128xf32, #tpu.memory_space<vmem>>, vector<32x128xf32>
    %c0_43 = arith.constant 0 : index
    %c0_44 = arith.constant 0 : index
    %235 = vector.load %arg5[%c0_43, %c0_44] : memref<32x128xf32, #tpu.memory_space<vmem>>, vector<32x128xf32>
    %c0_45 = arith.constant 0 : index
    %c0_46 = arith.constant 0 : index
    %236 = vector.load %arg6[%c0_45, %c0_46] : memref<1x128xf32, #tpu.memory_space<vmem>>, vector<1x128xf32>
    %cst_47 = arith.constant dense<0.000000e+00> : vector<16x128xf32>
    %237 = tpu.matmul %233, %234, %cst_47 {dimension_numbers = #tpu.dot_dimension_numbers<[1], [0], [0], [1], [0, 0, 1, 1], [], []>} : vector<16x32xf32>, vector<32x128xf32>, vector<16x128xf32> -> vector<16x128xf32>
    %238 = vector.broadcast %236 : vector<1x128xf32> to vector<16x128xf32>
    %239 = arith.addf %237, %238 : vector<16x128xf32>
    %cst_48 = arith.constant 0.000000e+00 : f32
    %240 = vector.broadcast %cst_48 : f32 to vector<2x32xf32>
    %cst_49 = arith.constant 0.000000e+00 : f32
    %241 = vector.broadcast %cst_49 : f32 to vector<2x32xf32>
    %242 = vector.extract_strided_slice %239 {offsets = [0, 0], sizes = [2, 128], strides = [1, 1]} : vector<16x128xf32> to vector<2x128xf32>
    %cst_50 = arith.constant dense<0.000000e+00> : vector<2x128xf32>
    %243 = tpu.matmul %240, %235, %cst_50 {dimension_numbers = #tpu.dot_dimension_numbers<[1], [0], [0], [1], [0, 0, 1, 1], [], []>} : vector<2x32xf32>, vector<32x128xf32>, vector<2x128xf32> -> vector<2x128xf32>
    %244 = arith.addf %242, %243 : vector<2x128xf32>
    %245 = vector.extract_strided_slice %244 {offsets = [0, 0], sizes = [2, 32], strides = [1, 1]} : vector<2x128xf32> to vector<2x32xf32>
    %246 = arith.negf %245 : vector<2x32xf32>
    %247 = math.exp %246 : vector<2x32xf32>
    %cst_51 = arith.constant 1.000000e+00 : f32
    %248 = vector.broadcast %cst_51 : f32 to vector<2x32xf32>
    %249 = arith.addf %248, %247 : vector<2x32xf32>
    %250 = arith.divf %248, %249 : vector<2x32xf32>
    %251 = vector.extract_strided_slice %244 {offsets = [0, 32], sizes = [2, 32], strides = [1, 1]} : vector<2x128xf32> to vector<2x32xf32>
    %252 = arith.negf %251 : vector<2x32xf32>
    %253 = math.exp %252 : vector<2x32xf32>
    %cst_52 = arith.constant 1.000000e+00 : f32
    %254 = vector.broadcast %cst_52 : f32 to vector<2x32xf32>
    %255 = arith.addf %254, %253 : vector<2x32xf32>
    %256 = arith.divf %254, %255 : vector<2x32xf32>
    %257 = vector.extract_strided_slice %244 {offsets = [0, 64], sizes = [2, 32], strides = [1, 1]} : vector<2x128xf32> to vector<2x32xf32>
    %258 = math.tanh %257 : vector<2x32xf32>
    %259 = vector.extract_strided_slice %244 {offsets = [0, 96], sizes = [2, 32], strides = [1, 1]} : vector<2x128xf32> to vector<2x32xf32>
    %260 = arith.negf %259 : vector<2x32xf32>
    %261 = math.exp %260 : vector<2x32xf32>
    %cst_53 = arith.constant 1.000000e+00 : f32
    %262 = vector.broadcast %cst_53 : f32 to vector<2x32xf32>
    %263 = arith.addf %262, %261 : vector<2x32xf32>
    %264 = arith.divf %262, %263 : vector<2x32xf32>
    %265 = arith.mulf %256, %241 : vector<2x32xf32>
    %266 = arith.mulf %250, %258 : vector<2x32xf32>
    %267 = arith.addf %265, %266 : vector<2x32xf32>
    %268 = math.tanh %267 : vector<2x32xf32>
    %269 = arith.mulf %264, %268 : vector<2x32xf32>
    %270 = vector.extract_strided_slice %239 {offsets = [2, 0], sizes = [2, 128], strides = [1, 1]} : vector<16x128xf32> to vector<2x128xf32>
    %cst_54 = arith.constant dense<0.000000e+00> : vector<2x128xf32>
    %271 = tpu.matmul %269, %235, %cst_54 {dimension_numbers = #tpu.dot_dimension_numbers<[1], [0], [0], [1], [0, 0, 1, 1], [], []>} : vector<2x32xf32>, vector<32x128xf32>, vector<2x128xf32> -> vector<2x128xf32>
    %272 = arith.addf %270, %271 : vector<2x128xf32>
    %273 = vector.extract_strided_slice %272 {offsets = [0, 0], sizes = [2, 32], strides = [1, 1]} : vector<2x128xf32> to vector<2x32xf32>
    %274 = arith.negf %273 : vector<2x32xf32>
    %275 = math.exp %274 : vector<2x32xf32>
    %cst_55 = arith.constant 1.000000e+00 : f32
    %276 = vector.broadcast %cst_55 : f32 to vector<2x32xf32>
    %277 = arith.addf %276, %275 : vector<2x32xf32>
    %278 = arith.divf %276, %277 : vector<2x32xf32>
    %279 = vector.extract_strided_slice %272 {offsets = [0, 32], sizes = [2, 32], strides = [1, 1]} : vector<2x128xf32> to vector<2x32xf32>
    %280 = arith.negf %279 : vector<2x32xf32>
    %281 = math.exp %280 : vector<2x32xf32>
    %cst_56 = arith.constant 1.000000e+00 : f32
    %282 = vector.broadcast %cst_56 : f32 to vector<2x32xf32>
    %283 = arith.addf %282, %281 : vector<2x32xf32>
    %284 = arith.divf %282, %283 : vector<2x32xf32>
    %285 = vector.extract_strided_slice %272 {offsets = [0, 64], sizes = [2, 32], strides = [1, 1]} : vector<2x128xf32> to vector<2x32xf32>
    %286 = math.tanh %285 : vector<2x32xf32>
    %287 = vector.extract_strided_slice %272 {offsets = [0, 96], sizes = [2, 32], strides = [1, 1]} : vector<2x128xf32> to vector<2x32xf32>
    %288 = arith.negf %287 : vector<2x32xf32>
    %289 = math.exp %288 : vector<2x32xf32>
    %cst_57 = arith.constant 1.000000e+00 : f32
    %290 = vector.broadcast %cst_57 : f32 to vector<2x32xf32>
    %291 = arith.addf %290, %289 : vector<2x32xf32>
    %292 = arith.divf %290, %291 : vector<2x32xf32>
    %293 = arith.mulf %284, %267 : vector<2x32xf32>
    %294 = arith.mulf %278, %286 : vector<2x32xf32>
    %295 = arith.addf %293, %294 : vector<2x32xf32>
    %296 = math.tanh %295 : vector<2x32xf32>
    %297 = arith.mulf %292, %296 : vector<2x32xf32>
    %298 = vector.extract_strided_slice %239 {offsets = [4, 0], sizes = [2, 128], strides = [1, 1]} : vector<16x128xf32> to vector<2x128xf32>
    %cst_58 = arith.constant dense<0.000000e+00> : vector<2x128xf32>
    %299 = tpu.matmul %297, %235, %cst_58 {dimension_numbers = #tpu.dot_dimension_numbers<[1], [0], [0], [1], [0, 0, 1, 1], [], []>} : vector<2x32xf32>, vector<32x128xf32>, vector<2x128xf32> -> vector<2x128xf32>
    %300 = arith.addf %298, %299 : vector<2x128xf32>
    %301 = vector.extract_strided_slice %300 {offsets = [0, 0], sizes = [2, 32], strides = [1, 1]} : vector<2x128xf32> to vector<2x32xf32>
    %302 = arith.negf %301 : vector<2x32xf32>
    %303 = math.exp %302 : vector<2x32xf32>
    %cst_59 = arith.constant 1.000000e+00 : f32
    %304 = vector.broadcast %cst_59 : f32 to vector<2x32xf32>
    %305 = arith.addf %304, %303 : vector<2x32xf32>
    %306 = arith.divf %304, %305 : vector<2x32xf32>
    %307 = vector.extract_strided_slice %300 {offsets = [0, 32], sizes = [2, 32], strides = [1, 1]} : vector<2x128xf32> to vector<2x32xf32>
    %308 = arith.negf %307 : vector<2x32xf32>
    %309 = math.exp %308 : vector<2x32xf32>
    %cst_60 = arith.constant 1.000000e+00 : f32
    %310 = vector.broadcast %cst_60 : f32 to vector<2x32xf32>
    %311 = arith.addf %310, %309 : vector<2x32xf32>
    %312 = arith.divf %310, %311 : vector<2x32xf32>
    %313 = vector.extract_strided_slice %300 {offsets = [0, 64], sizes = [2, 32], strides = [1, 1]} : vector<2x128xf32> to vector<2x32xf32>
    %314 = math.tanh %313 : vector<2x32xf32>
    %315 = vector.extract_strided_slice %300 {offsets = [0, 96], sizes = [2, 32], strides = [1, 1]} : vector<2x128xf32> to vector<2x32xf32>
    %316 = arith.negf %315 : vector<2x32xf32>
    %317 = math.exp %316 : vector<2x32xf32>
    %cst_61 = arith.constant 1.000000e+00 : f32
    %318 = vector.broadcast %cst_61 : f32 to vector<2x32xf32>
    %319 = arith.addf %318, %317 : vector<2x32xf32>
    %320 = arith.divf %318, %319 : vector<2x32xf32>
    %321 = arith.mulf %312, %295 : vector<2x32xf32>
    %322 = arith.mulf %306, %314 : vector<2x32xf32>
    %323 = arith.addf %321, %322 : vector<2x32xf32>
    %324 = math.tanh %323 : vector<2x32xf32>
    %325 = arith.mulf %320, %324 : vector<2x32xf32>
    %326 = vector.extract_strided_slice %239 {offsets = [6, 0], sizes = [2, 128], strides = [1, 1]} : vector<16x128xf32> to vector<2x128xf32>
    %cst_62 = arith.constant dense<0.000000e+00> : vector<2x128xf32>
    %327 = tpu.matmul %325, %235, %cst_62 {dimension_numbers = #tpu.dot_dimension_numbers<[1], [0], [0], [1], [0, 0, 1, 1], [], []>} : vector<2x32xf32>, vector<32x128xf32>, vector<2x128xf32> -> vector<2x128xf32>
    %328 = arith.addf %326, %327 : vector<2x128xf32>
    %329 = vector.extract_strided_slice %328 {offsets = [0, 0], sizes = [2, 32], strides = [1, 1]} : vector<2x128xf32> to vector<2x32xf32>
    %330 = arith.negf %329 : vector<2x32xf32>
    %331 = math.exp %330 : vector<2x32xf32>
    %cst_63 = arith.constant 1.000000e+00 : f32
    %332 = vector.broadcast %cst_63 : f32 to vector<2x32xf32>
    %333 = arith.addf %332, %331 : vector<2x32xf32>
    %334 = arith.divf %332, %333 : vector<2x32xf32>
    %335 = vector.extract_strided_slice %328 {offsets = [0, 32], sizes = [2, 32], strides = [1, 1]} : vector<2x128xf32> to vector<2x32xf32>
    %336 = arith.negf %335 : vector<2x32xf32>
    %337 = math.exp %336 : vector<2x32xf32>
    %cst_64 = arith.constant 1.000000e+00 : f32
    %338 = vector.broadcast %cst_64 : f32 to vector<2x32xf32>
    %339 = arith.addf %338, %337 : vector<2x32xf32>
    %340 = arith.divf %338, %339 : vector<2x32xf32>
    %341 = vector.extract_strided_slice %328 {offsets = [0, 64], sizes = [2, 32], strides = [1, 1]} : vector<2x128xf32> to vector<2x32xf32>
    %342 = math.tanh %341 : vector<2x32xf32>
    %343 = vector.extract_strided_slice %328 {offsets = [0, 96], sizes = [2, 32], strides = [1, 1]} : vector<2x128xf32> to vector<2x32xf32>
    %344 = arith.negf %343 : vector<2x32xf32>
    %345 = math.exp %344 : vector<2x32xf32>
    %cst_65 = arith.constant 1.000000e+00 : f32
    %346 = vector.broadcast %cst_65 : f32 to vector<2x32xf32>
    %347 = arith.addf %346, %345 : vector<2x32xf32>
    %348 = arith.divf %346, %347 : vector<2x32xf32>
    %349 = arith.mulf %340, %323 : vector<2x32xf32>
    %350 = arith.mulf %334, %342 : vector<2x32xf32>
    %351 = arith.addf %349, %350 : vector<2x32xf32>
    %352 = math.tanh %351 : vector<2x32xf32>
    %353 = arith.mulf %348, %352 : vector<2x32xf32>
    %354 = vector.extract_strided_slice %239 {offsets = [8, 0], sizes = [2, 128], strides = [1, 1]} : vector<16x128xf32> to vector<2x128xf32>
    %cst_66 = arith.constant dense<0.000000e+00> : vector<2x128xf32>
    %355 = tpu.matmul %353, %235, %cst_66 {dimension_numbers = #tpu.dot_dimension_numbers<[1], [0], [0], [1], [0, 0, 1, 1], [], []>} : vector<2x32xf32>, vector<32x128xf32>, vector<2x128xf32> -> vector<2x128xf32>
    %356 = arith.addf %354, %355 : vector<2x128xf32>
    %357 = vector.extract_strided_slice %356 {offsets = [0, 0], sizes = [2, 32], strides = [1, 1]} : vector<2x128xf32> to vector<2x32xf32>
    %358 = arith.negf %357 : vector<2x32xf32>
    %359 = math.exp %358 : vector<2x32xf32>
    %cst_67 = arith.constant 1.000000e+00 : f32
    %360 = vector.broadcast %cst_67 : f32 to vector<2x32xf32>
    %361 = arith.addf %360, %359 : vector<2x32xf32>
    %362 = arith.divf %360, %361 : vector<2x32xf32>
    %363 = vector.extract_strided_slice %356 {offsets = [0, 32], sizes = [2, 32], strides = [1, 1]} : vector<2x128xf32> to vector<2x32xf32>
    %364 = arith.negf %363 : vector<2x32xf32>
    %365 = math.exp %364 : vector<2x32xf32>
    %cst_68 = arith.constant 1.000000e+00 : f32
    %366 = vector.broadcast %cst_68 : f32 to vector<2x32xf32>
    %367 = arith.addf %366, %365 : vector<2x32xf32>
    %368 = arith.divf %366, %367 : vector<2x32xf32>
    %369 = vector.extract_strided_slice %356 {offsets = [0, 64], sizes = [2, 32], strides = [1, 1]} : vector<2x128xf32> to vector<2x32xf32>
    %370 = math.tanh %369 : vector<2x32xf32>
    %371 = vector.extract_strided_slice %356 {offsets = [0, 96], sizes = [2, 32], strides = [1, 1]} : vector<2x128xf32> to vector<2x32xf32>
    %372 = arith.negf %371 : vector<2x32xf32>
    %373 = math.exp %372 : vector<2x32xf32>
    %cst_69 = arith.constant 1.000000e+00 : f32
    %374 = vector.broadcast %cst_69 : f32 to vector<2x32xf32>
    %375 = arith.addf %374, %373 : vector<2x32xf32>
    %376 = arith.divf %374, %375 : vector<2x32xf32>
    %377 = arith.mulf %368, %351 : vector<2x32xf32>
    %378 = arith.mulf %362, %370 : vector<2x32xf32>
    %379 = arith.addf %377, %378 : vector<2x32xf32>
    %380 = math.tanh %379 : vector<2x32xf32>
    %381 = arith.mulf %376, %380 : vector<2x32xf32>
    %382 = vector.extract_strided_slice %239 {offsets = [10, 0], sizes = [2, 128], strides = [1, 1]} : vector<16x128xf32> to vector<2x128xf32>
    %cst_70 = arith.constant dense<0.000000e+00> : vector<2x128xf32>
    %383 = tpu.matmul %381, %235, %cst_70 {dimension_numbers = #tpu.dot_dimension_numbers<[1], [0], [0], [1], [0, 0, 1, 1], [], []>} : vector<2x32xf32>, vector<32x128xf32>, vector<2x128xf32> -> vector<2x128xf32>
    %384 = arith.addf %382, %383 : vector<2x128xf32>
    %385 = vector.extract_strided_slice %384 {offsets = [0, 0], sizes = [2, 32], strides = [1, 1]} : vector<2x128xf32> to vector<2x32xf32>
    %386 = arith.negf %385 : vector<2x32xf32>
    %387 = math.exp %386 : vector<2x32xf32>
    %cst_71 = arith.constant 1.000000e+00 : f32
    %388 = vector.broadcast %cst_71 : f32 to vector<2x32xf32>
    %389 = arith.addf %388, %387 : vector<2x32xf32>
    %390 = arith.divf %388, %389 : vector<2x32xf32>
    %391 = vector.extract_strided_slice %384 {offsets = [0, 32], sizes = [2, 32], strides = [1, 1]} : vector<2x128xf32> to vector<2x32xf32>
    %392 = arith.negf %391 : vector<2x32xf32>
    %393 = math.exp %392 : vector<2x32xf32>
    %cst_72 = arith.constant 1.000000e+00 : f32
    %394 = vector.broadcast %cst_72 : f32 to vector<2x32xf32>
    %395 = arith.addf %394, %393 : vector<2x32xf32>
    %396 = arith.divf %394, %395 : vector<2x32xf32>
    %397 = vector.extract_strided_slice %384 {offsets = [0, 64], sizes = [2, 32], strides = [1, 1]} : vector<2x128xf32> to vector<2x32xf32>
    %398 = math.tanh %397 : vector<2x32xf32>
    %399 = vector.extract_strided_slice %384 {offsets = [0, 96], sizes = [2, 32], strides = [1, 1]} : vector<2x128xf32> to vector<2x32xf32>
    %400 = arith.negf %399 : vector<2x32xf32>
    %401 = math.exp %400 : vector<2x32xf32>
    %cst_73 = arith.constant 1.000000e+00 : f32
    %402 = vector.broadcast %cst_73 : f32 to vector<2x32xf32>
    %403 = arith.addf %402, %401 : vector<2x32xf32>
    %404 = arith.divf %402, %403 : vector<2x32xf32>
    %405 = arith.mulf %396, %379 : vector<2x32xf32>
    %406 = arith.mulf %390, %398 : vector<2x32xf32>
    %407 = arith.addf %405, %406 : vector<2x32xf32>
    %408 = math.tanh %407 : vector<2x32xf32>
    %409 = arith.mulf %404, %408 : vector<2x32xf32>
    %410 = vector.extract_strided_slice %239 {offsets = [12, 0], sizes = [2, 128], strides = [1, 1]} : vector<16x128xf32> to vector<2x128xf32>
    %cst_74 = arith.constant dense<0.000000e+00> : vector<2x128xf32>
    %411 = tpu.matmul %409, %235, %cst_74 {dimension_numbers = #tpu.dot_dimension_numbers<[1], [0], [0], [1], [0, 0, 1, 1], [], []>} : vector<2x32xf32>, vector<32x128xf32>, vector<2x128xf32> -> vector<2x128xf32>
    %412 = arith.addf %410, %411 : vector<2x128xf32>
    %413 = vector.extract_strided_slice %412 {offsets = [0, 0], sizes = [2, 32], strides = [1, 1]} : vector<2x128xf32> to vector<2x32xf32>
    %414 = arith.negf %413 : vector<2x32xf32>
    %415 = math.exp %414 : vector<2x32xf32>
    %cst_75 = arith.constant 1.000000e+00 : f32
    %416 = vector.broadcast %cst_75 : f32 to vector<2x32xf32>
    %417 = arith.addf %416, %415 : vector<2x32xf32>
    %418 = arith.divf %416, %417 : vector<2x32xf32>
    %419 = vector.extract_strided_slice %412 {offsets = [0, 32], sizes = [2, 32], strides = [1, 1]} : vector<2x128xf32> to vector<2x32xf32>
    %420 = arith.negf %419 : vector<2x32xf32>
    %421 = math.exp %420 : vector<2x32xf32>
    %cst_76 = arith.constant 1.000000e+00 : f32
    %422 = vector.broadcast %cst_76 : f32 to vector<2x32xf32>
    %423 = arith.addf %422, %421 : vector<2x32xf32>
    %424 = arith.divf %422, %423 : vector<2x32xf32>
    %425 = vector.extract_strided_slice %412 {offsets = [0, 64], sizes = [2, 32], strides = [1, 1]} : vector<2x128xf32> to vector<2x32xf32>
    %426 = math.tanh %425 : vector<2x32xf32>
    %427 = vector.extract_strided_slice %412 {offsets = [0, 96], sizes = [2, 32], strides = [1, 1]} : vector<2x128xf32> to vector<2x32xf32>
    %428 = arith.negf %427 : vector<2x32xf32>
    %429 = math.exp %428 : vector<2x32xf32>
    %cst_77 = arith.constant 1.000000e+00 : f32
    %430 = vector.broadcast %cst_77 : f32 to vector<2x32xf32>
    %431 = arith.addf %430, %429 : vector<2x32xf32>
    %432 = arith.divf %430, %431 : vector<2x32xf32>
    %433 = arith.mulf %424, %407 : vector<2x32xf32>
    %434 = arith.mulf %418, %426 : vector<2x32xf32>
    %435 = arith.addf %433, %434 : vector<2x32xf32>
    %436 = math.tanh %435 : vector<2x32xf32>
    %437 = arith.mulf %432, %436 : vector<2x32xf32>
    %438 = vector.extract_strided_slice %239 {offsets = [14, 0], sizes = [2, 128], strides = [1, 1]} : vector<16x128xf32> to vector<2x128xf32>
    %cst_78 = arith.constant dense<0.000000e+00> : vector<2x128xf32>
    %439 = tpu.matmul %437, %235, %cst_78 {dimension_numbers = #tpu.dot_dimension_numbers<[1], [0], [0], [1], [0, 0, 1, 1], [], []>} : vector<2x32xf32>, vector<32x128xf32>, vector<2x128xf32> -> vector<2x128xf32>
    %440 = arith.addf %438, %439 : vector<2x128xf32>
    %441 = vector.extract_strided_slice %440 {offsets = [0, 0], sizes = [2, 32], strides = [1, 1]} : vector<2x128xf32> to vector<2x32xf32>
    %442 = arith.negf %441 : vector<2x32xf32>
    %443 = math.exp %442 : vector<2x32xf32>
    %cst_79 = arith.constant 1.000000e+00 : f32
    %444 = vector.broadcast %cst_79 : f32 to vector<2x32xf32>
    %445 = arith.addf %444, %443 : vector<2x32xf32>
    %446 = arith.divf %444, %445 : vector<2x32xf32>
    %447 = vector.extract_strided_slice %440 {offsets = [0, 32], sizes = [2, 32], strides = [1, 1]} : vector<2x128xf32> to vector<2x32xf32>
    %448 = arith.negf %447 : vector<2x32xf32>
    %449 = math.exp %448 : vector<2x32xf32>
    %cst_80 = arith.constant 1.000000e+00 : f32
    %450 = vector.broadcast %cst_80 : f32 to vector<2x32xf32>
    %451 = arith.addf %450, %449 : vector<2x32xf32>
    %452 = arith.divf %450, %451 : vector<2x32xf32>
    %453 = vector.extract_strided_slice %440 {offsets = [0, 64], sizes = [2, 32], strides = [1, 1]} : vector<2x128xf32> to vector<2x32xf32>
    %454 = math.tanh %453 : vector<2x32xf32>
    %455 = vector.extract_strided_slice %440 {offsets = [0, 96], sizes = [2, 32], strides = [1, 1]} : vector<2x128xf32> to vector<2x32xf32>
    %456 = arith.negf %455 : vector<2x32xf32>
    %457 = math.exp %456 : vector<2x32xf32>
    %cst_81 = arith.constant 1.000000e+00 : f32
    %458 = vector.broadcast %cst_81 : f32 to vector<2x32xf32>
    %459 = arith.addf %458, %457 : vector<2x32xf32>
    %460 = arith.divf %458, %459 : vector<2x32xf32>
    %461 = arith.mulf %452, %435 : vector<2x32xf32>
    %462 = arith.mulf %446, %454 : vector<2x32xf32>
    %463 = arith.addf %461, %462 : vector<2x32xf32>
    %464 = math.tanh %463 : vector<2x32xf32>
    %465 = arith.mulf %460, %464 : vector<2x32xf32>
    %c0_82 = arith.constant 0 : index
    %c0_83 = arith.constant 0 : index
    %466 = vector.load %arg7[%c0_82, %c0_83] : memref<32x16xf32, #tpu.memory_space<vmem>>, vector<32x16xf32>
    %cst_84 = arith.constant dense<0.000000e+00> : vector<2x16xf32>
    %467 = tpu.matmul %465, %466, %cst_84 {dimension_numbers = #tpu.dot_dimension_numbers<[1], [0], [0], [1], [0, 0, 1, 1], [], []>} : vector<2x32xf32>, vector<32x16xf32>, vector<2x16xf32> -> vector<2x16xf32>
    %c0_85 = arith.constant 0 : index
    %c0_86 = arith.constant 0 : index
    %468 = vector.load %arg8[%c0_85, %c0_86] : memref<1x16xf32, #tpu.memory_space<vmem>>, vector<1x16xf32>
    %469 = vector.broadcast %468 : vector<1x16xf32> to vector<2x16xf32>
    %470 = arith.addf %467, %469 : vector<2x16xf32>
    %c0_87 = arith.constant 0 : index
    %c0_88 = arith.constant 0 : index
    %471 = vector.load %arg9[%c0_87, %c0_88] : memref<2x16xf32, #tpu.memory_space<vmem>>, vector<2x16xf32>
    tpu.vector_store %arg9[%c0_87, %c0_88], %470 {strides = array<i32>} : memref<2x16xf32, #tpu.memory_space<vmem>>, vector<2x16xf32>,
    return
  }
}

</mosaic_0001>

<bundles_post_ra>
// kernel: tpu_custom_call.1
= control target key start
LH: loop header
LB: loop body
LE: loop exit
PB: predicated region body
PF: predicated region fallthrough
CT: control target
= control target key end

     0   :  { %14 = vsyncpa [#allocation3], 0  ;;  %s3050_s0 = inlined_call_operand.vmem [shape: f32[16,16], index: 0, kind: input, shape index: {}]   ;;  %s3051_s1 = inlined_call_operand.hbm [shape: f32[16,128], index: 1, kind: input, shape index: {}]   ;;  %s3052_s2 = inlined_call_operand.vmem [shape: f32[32,128], index: 2, kind: input, shape index: {}]   ;;  %s3053_s3 = inlined_call_operand.vmem [shape: f32[1,128], index: 3, kind: input, shape index: {}]   ;;  %s3054_s4 = inlined_call_operand.hbm [shape: f32[32,128], index: 4, kind: input, shape index: {}]   ;;  %s3055_s5 = inlined_call_operand.hbm [shape: f32[32,128], index: 5, kind: input, shape index: {}]   ;;  %s3056_s6 = inlined_call_operand.vmem [shape: f32[1,128], index: 6, kind: input, shape index: {}]   ;;  %s3057_s7 = inlined_call_operand.vmem [shape: f32[32,16], index: 7, kind: input, shape index: {}]   ;;  %s3058_s8 = inlined_call_operand.vmem [shape: f32[1,16], index: 8, kind: input, shape index: {}]   ;;  %s3059_s9 = inlined_call_operand.hbm [shape: f32[2,16], index: 9, kind: output, shape index: {}]  }
   0x1   :  { %15 = vsyncpa [#allocation6], 0 }
   0x2   :  { %16 = vsyncpa [#allocation4], 0  ;;  %s2629_s30 = smov [#allocation5]   ;;  %s2630_s11 = smov [#allocation2]  }
   0x3   :  { %s40_s10 = sshll.u32 %s2629_s30, 4  ;;  %s24_s12 = sshll.u32 %s2630_s11, 4  ;;  %s41_s10 = int_to_ptr.vmem [resolvable:$true] %s40_s10  ;;  %s25_s12 = int_to_ptr.vmem [resolvable:$true] %s24_s12 }
   0x4   :  { %s2551_s13 = scalar_lea.vmem %s41_s10, 512  ;;  %p2556_p1 = scmp.lt.s32.totalorder %s41_s10, %s41_s10 }
   0x5   :  { %p2552_p0 = scmp.ne.s32.totalorder %s41_s10, %s2551_s13  ;;  %p2557_p2 = scmp.lt.s32.totalorder %s2551_s13, %s2551_s13 }
   0x7   :  { %p2558_p3 = por %p2557_p2, %p2556_p1 }
   0x9   :  { %p2559_p4 = pnand %p2558_p3, %p2552_p0 }
   0xb   :  { %2562 = shalt.err (!%p2559_p4)
}
   0xc   :  { %s2631_s14 = smov 128   ;;  %s2632_s15 = smov 8  }
   0xd   :  { %46 = dma.hbm_to_vmem [thread:$0]  %s3054_s4, 512, %s41_s10, [#allocation6], %s2631_s14, %s2631_s14, %s2632_s15  }
   0xe   :  { %s2571_s18 = scalar_lea.vmem %s25_s12, 256  ;;  %p2576_p6 = scmp.lt.s32.totalorder %s25_s12, %s25_s12 }
   0xf   :  { %p2572_p5 = scmp.ne.s32.totalorder %s25_s12, %s2571_s18  ;;  %p2577_p7 = scmp.lt.s32.totalorder %s2571_s18, %s2571_s18 }
  0x11   :  { %p2578_p8 = por %p2577_p7, %p2576_p6 }
  0x13   :  { %p2579_p9 = pnand %p2578_p8, %p2572_p5 }
  0x15   :  { %2582 = shalt.err (!%p2579_p9)
}
  0x16   :  { %30 = dma.hbm_to_vmem [thread:$0]  %s3051_s1, 256, %s25_s12, [#allocation3], %s2631_s14, %s2631_s14, %s2632_s15  }
  0x17   :  { %s2633_s21 = smov [#allocation7]  }
  0x18   :  { %s52_s22 = sshll.u32 %s2633_s21, 4  ;;  %s53_s22 = int_to_ptr.vmem [resolvable:$true] %s52_s22 }
  0x19   :  { %s2591_s23 = scalar_lea.vmem %s53_s22, 512  ;;  %p2596_p11 = scmp.lt.s32.totalorder %s53_s22, %s53_s22 }
  0x1a   :  { %p2592_p10 = scmp.ne.s32.totalorder %s53_s22, %s2591_s23  ;;  %p2597_p12 = scmp.lt.s32.totalorder %s2591_s23, %s2591_s23 }
  0x1c   :  { %p2598_p13 = por %p2597_p12, %p2596_p11 }
  0x1e   :  { %p2599_p0 = pnand %p2598_p13, %p2592_p10 }
  0x20   :  { %2602 = shalt.err (!%p2599_p0)
}
  0x21   :  { %58 = dma.hbm_to_vmem [thread:$0]  %s3055_s5, 512, %s53_s22, [#allocation6], %s2631_s14, %s2631_s14, %s2632_s15  }
  0x22   :  { %2623 = dma.done.wait [#allocation3], 256  }
  0x23   :  { %2624 = vsyncadd [#allocation3], 4294967040 }
  0x24   :  { %2625 = dma.done.wait [#allocation6], 1024  }
  0x25   :  { %2626 = vsyncadd [#allocation6], 4294966272  ;;  %v2634_v0 = vmov 0.0   ;;  %vm2635_vm0 = vmmov 0   ;;  %v77_v1 = vld [vmem:[#allocation2 + $0x8] sm:$0xff]  ;;  %v2704_v2 = vld [vmem:[%s3052_s2 + $0x18] sm:$0xff] }
  0x26   :  { %2207 = vmatprep.subr.mxu1 %v2634_v0  ;;  %2215 = vmatprep.mubr.msk.f32.mxu1 %vm2635_vm0, %v2634_v0  ;;  %v76_v3 = vld [vmem:[#allocation2] sm:$0xff]  ;;  %v2710_v4 = vld [vmem:[%s3052_s2 + $0x10] sm:$0xff]  ;;  %vm89_vm1 = vcmask 130048   ;;  %v75_v6 = vld [vmem:[%s3050_s0 + $0x8] sm:$0xff]  ;;  %s2636_s14 = smov 64   ;;  %vm171_vm2 = vcmask 261120  }
  0x27   :  { %2200 = vmatprep.subr.mxu0 %v77_v1  ;;  %2208 = vmatpush3.msra.mxu1 %v2704_v2  ;;  %v74_v5 = vld [vmem:[%s3050_s0] sm:$0xff]  ;;  %v2723_v7 = vld [vmem:[%s3052_s2 + $0x8] sm:$0xff]  ;;  %vm1014_vm3 = vcmask 1041408   ;;  %vm1016_vm4 = vcmask 1043456   ;;  %vm1018_vm5 = vcmask 1045504   ;;  %vm2049_vm6 = vcmask 123904  }
  0x28   :  { %2201 = vmatpush3.msra.mxu0 %v77_v1  ;;  %2209 = vmatprep.subr.mxu1 %v2634_v0  ;;  %v2729_v8 = vld [vmem:[%s3052_s2] sm:$0xff] }
  0x29   :  { %2202 = vmatprep.subr.mxu0 %v76_v3  ;;  %2210 = vmatpush3.msra.mxu1 %v2710_v4  ;;  %v2067_v9 = vld [vmem:[%s3053_s3] ss:$0 sm:$0xff]  ;;  %s2637_s3 = smov 32  }
  0x2a   :  { %2203 = vmatpush3.msra.mxu0 %v76_v3  ;;  %2204 = vmatprep.mubr.msk.f32.mxu0 %vm89_vm1, %v74_v5 }
  0x2b   :  { %2211 = vmatprep.subr.mxu1 %v2634_v0  ;;  %2205 = vmatmul.mubr.msk.f32.vlgmr.msra.gmra.mxu0 %vm89_vm1, %v75_v6 }
  0x2c   :  { %2212 = vmatpush3.msra.mxu1 %v2723_v7  ;;  %2218 = vmatprep.subr.mxu0 %v2634_v0 }
  0x2d   :  { %2213 = vmatprep.subr.mxu1 %v2634_v0  ;;  %2219 = vmatpush3.msra.mxu0 %v2704_v2 }
  0x2e   :  { %2214 = vmatpush3.msra.mxu1 %v2729_v8  ;;  %2220 = vmatprep.subr.mxu0 %v2634_v0 }
  0x2f   :  { %2216 = vmatmul.mubr.f32.vlgmr.msra.gmra.mxu1 %v2634_v0  ;;  %2221 = vmatpush3.msra.mxu0 %v2710_v4 }
  0x30   :  { %2222 = vmatprep.subr.mxu0 %v2634_v0  ;;  %2226 = vmatprep.mubr.msk.f32.mxu0 %vm2635_vm0, %v2634_v0 }
  0x31   :  { %2223 = vmatpush3.msra.mxu0 %v2723_v7  ;;  %2229 = vmatprep.subr.mxu1 %v2634_v0 }
  0x32   :  { %2224 = vmatprep.subr.mxu0 %v2634_v0  ;;  %2230 = vmatpush3.msra.mxu1 %v2704_v2 }
  0x33   :  { %2225 = vmatpush3.msra.mxu0 %v2729_v8  ;;  %2231 = vmatprep.subr.mxu1 %v2634_v0 }
  0x34   :  { %2232 = vmatpush3.msra.mxu1 %v2710_v4  ;;  %2237 = vmatprep.mubr.msk.f32.mxu1 %vm2635_vm0, %v2634_v0 }
  0x35   :  { %2233 = vmatprep.subr.mxu1 %v2634_v0  ;;  %2240 = vmatprep.subr.mxu0 %v2634_v0 }
  0x36   :  { %2234 = vmatpush3.msra.mxu1 %v2723_v7 }
  0x37   :  { %2235 = vmatprep.subr.mxu1 %v2634_v0 }
  0x38   :  { %2236 = vmatpush3.msra.mxu1 %v2729_v8 }
  0x39   :  { %2251 = vmatprep.subr.mxu1 %v2634_v0 }
  0xeb   :  { %v2206_v10 = vpop.f32.mrf.mxu0 }
  0xec   :  { %v2760_v11 = vadd.f32 %v2206_v10, %v2067_v9 }
  0xed   :  { %v162_v12 = vpop.f32.mrf.mxu0 }
  0xee   :  { %v2762_v13 = vadd.f32 %v2067_v9, %v162_v12 }
  0xef   :  { %v241_v14 = vpop.f32.mrf.mxu1 }
  0xf0   :  { %v245_v15 = vadd.f32 %v241_v14, %v2762_v13 }
  0xf1   :  { %v2217_v16 = vpop.f32.mrf.mxu1 }
  0xf2   :  { %2415 = vtanh.f32 %v245_v15  ;;  %v2070_v18 = vmul.f32 -1.442695, %v245_v15 }
  0xf4   :  { %2417 = vpow2.f32 %v2070_v18 }
  0xff   :  { %v2416_v17 = vpop.eup %2415 }
 0x100   :  { %255 = vrot.lane.b32.xlu0 %v2416_v17, %s2636_s14 }
 0x101   :  { %v2418_v19 = vpop.eup %2417 }
 0x102   :  { %v249_v20 = vadd.f32 1.0, %v2418_v19 }
 0x104   :  { %2419 = vrcp.f32 %v249_v20 }
 0x111   :  { %v2420_v21 = vpop.eup %2419 }
 0x112   :  { %v253_v24 = vmul.f32 0.0, %v2420_v21 }
 0x172   :  { %v256_v22 = vpop.permute.xlu0 %255 }
 0x173   :  { %v258_v23 = vmul.f32 %v2420_v21, %v256_v22 }
 0x175   :  { %260 = vrot.lane.b32.xlu0 %v258_v23, %s2637_s3 }
 0x1e7   :  { %v261_v25 = vpop.permute.xlu0 %260 }
 0x1e8   :  { %v263_v26 = vadd.f32 %v261_v25, %v253_v24 }
 0x1ea   :  { %2421 = vtanh.f32 %v263_v26  ;;  %v357_v42 = vrot.slane %v263_v26, 6 }
 0x1f7   :  { %v2422_v27 = vpop.eup %2421 }
 0x1f8   :  { %266 = vrot.lane.b32.xlu1 %v2422_v27, %s2636_s14 }
 0x26a   :  { %v267_v28 = vpop.permute.xlu1 %266 }
 0x26b   :  { %v2768_v29 = vmul.f32 %v2420_v21, %v267_v28 }
 0x26d   :  { %271 = vrot.lane.b32.xlu1 %v2768_v29, %s2637_s3 }
 0x2df   :  { %v272_v30 = vpop.permute.xlu1 %271 }
 0x2e0   :  { %2227 = vmatmul.mubr.msk.f32.vlgmr.msra.gmra.mxu0 %vm171_vm2, %v272_v30 }
 0x2e1   :  { %2241 = vmatpush3.msra.mxu0 %v2704_v2  ;;  %2248 = vmatprep.mubr.msk.f32.mxu0 %vm2635_vm0, %v2634_v0 }
 0x2e2   :  { %2242 = vmatprep.subr.mxu0 %v2634_v0 }
 0x2e3   :  { %2243 = vmatpush3.msra.mxu0 %v2710_v4 }
 0x2e4   :  { %2244 = vmatprep.subr.mxu0 %v2634_v0 }
 0x2e5   :  { %2245 = vmatpush3.msra.mxu0 %v2723_v7 }
 0x2e6   :  { %2246 = vmatprep.subr.mxu0 %v2634_v0 }
 0x2e7   :  { %2247 = vmatpush3.msra.mxu0 %v2729_v8 }
 0x2e8   :  { %2262 = vmatprep.subr.mxu0 %v2634_v0 }
 0x3a0   :  { %v341_v31 = vpop.f32.mrf.mxu0 }
 0x3a1   :  { %v346_v32 = vrot.slane %v341_v31, 6 }
 0x3a2   :  { %v2228_v33 = vpop.f32.mrf.mxu0 }
 0x3a3   :  { %v348_v34 = vadd.f32 %v346_v32, %v2762_v13 }
 0x3a5   :  { %2423 = vtanh.f32 %v348_v34  ;;  %v2072_v36 = vmul.f32 -1.442695, %v348_v34 }
 0x3a7   :  { %2425 = vpow2.f32 %v2072_v36 }
 0x3b2   :  { %v2424_v35 = vpop.eup %2423 }
 0x3b3   :  { %361 = vrot.lane.b32.xlu0 %v2424_v35, %s2636_s14 }
 0x3b4   :  { %v2426_v37 = vpop.eup %2425 }
 0x3b5   :  { %v352_v38 = vadd.f32 1.0, %v2426_v37 }
 0x3b7   :  { %2427 = vrcp.f32 %v352_v38 }
 0x3c4   :  { %v2428_v39 = vpop.eup %2427 }
 0x3c5   :  { %v359_v43 = vmul.f32 %v2428_v39, %v357_v42 }
 0x425   :  { %v362_v40 = vpop.permute.xlu0 %361 }
 0x426   :  { %v364_v41 = vmul.f32 %v2428_v39, %v362_v40 }
 0x428   :  { %366 = vrot.lane.b32.xlu1 %v364_v41, %s2637_s3 }
 0x49a   :  { %v367_v44 = vpop.permute.xlu1 %366 }
 0x49b   :  { %v369_v45 = vadd.f32 %v367_v44, %v359_v43 }
 0x49d   :  { %2429 = vtanh.f32 %v369_v45  ;;  %v464_v62 = vrot.slane %v369_v45, 6 }
 0x4aa   :  { %v2430_v46 = vpop.eup %2429 }
 0x4ab   :  { %372 = vrot.lane.b32.xlu0 %v2430_v46, %s2636_s14 }
 0x51d   :  { %v373_v47 = vpop.permute.xlu0 %372 }
 0x51e   :  { %v375_v48 = vmul.f32 %v2428_v39, %v373_v47 }
 0x520   :  { %v377_v49 = vrot.slane %v375_v48, 2  ;;  %v1015_v10 = vsel %vm1014_vm3, %v2768_v29, %v375_v48 }
 0x522   :  { %378 = vrot.lane.b32.xlu1 %v377_v49, %s2637_s3 }
 0x594   :  { %v379_v50 = vpop.permute.xlu1 %378 }
 0x595   :  { %2238 = vmatmul.mubr.msk.f32.vlgmr.msra.gmra.mxu1 %vm171_vm2, %v379_v50 }
 0x596   :  { %2252 = vmatpush3.msra.mxu1 %v2704_v2  ;;  %2259 = vmatprep.mubr.msk.f32.mxu1 %vm2635_vm0, %v2634_v0 }
 0x597   :  { %2253 = vmatprep.subr.mxu1 %v2634_v0 }
 0x598   :  { %2254 = vmatpush3.msra.mxu1 %v2710_v4 }
 0x599   :  { %2255 = vmatprep.subr.mxu1 %v2634_v0 }
 0x59a   :  { %2256 = vmatpush3.msra.mxu1 %v2723_v7 }
 0x59b   :  { %2257 = vmatprep.subr.mxu1 %v2634_v0 }
 0x59c   :  { %2258 = vmatpush3.msra.mxu1 %v2729_v8 }
 0x59d   :  { %2273 = vmatprep.subr.mxu1 %v2634_v0 }
 0x655   :  { %v448_v51 = vpop.f32.mrf.mxu1 }
 0x656   :  { %v453_v52 = vrot.slane %v448_v51, 4 }
 0x657   :  { %v2239_v53 = vpop.f32.mrf.mxu1 }
 0x658   :  { %v455_v54 = vadd.f32 %v453_v52, %v2762_v13 }
 0x65a   :  { %2431 = vtanh.f32 %v455_v54  ;;  %v2074_v56 = vmul.f32 -1.442695, %v455_v54 }
 0x65c   :  { %2433 = vpow2.f32 %v2074_v56 }
 0x667   :  { %v2432_v55 = vpop.eup %2431 }
 0x668   :  { %468 = vrot.lane.b32.xlu0 %v2432_v55, %s2636_s14 }
 0x669   :  { %v2434_v57 = vpop.eup %2433 }
 0x66a   :  { %v459_v58 = vadd.f32 1.0, %v2434_v57 }
 0x66c   :  { %2435 = vrcp.f32 %v459_v58 }
 0x679   :  { %v2436_v59 = vpop.eup %2435 }
 0x67a   :  { %v466_v63 = vmul.f32 %v2436_v59, %v464_v62 }
 0x6da   :  { %v469_v60 = vpop.permute.xlu0 %468 }
 0x6db   :  { %v471_v61 = vmul.f32 %v2436_v59, %v469_v60 }
 0x6dd   :  { %473 = vrot.lane.b32.xlu1 %v471_v61, %s2637_s3 }
 0x74f   :  { %v474_v1 = vpop.permute.xlu1 %473 }
 0x750   :  { %v476_v3 = vadd.f32 %v474_v1, %v466_v63 }
 0x752   :  { %2437 = vtanh.f32 %v476_v3  ;;  %v571_v27 = vrot.slane %v476_v3, 6 }
 0x75f   :  { %v2438_v5 = vpop.eup %2437 }
 0x760   :  { %479 = vrot.lane.b32.xlu0 %v2438_v5, %s2636_s14 }
 0x7d2   :  { %v480_v6 = vpop.permute.xlu0 %479 }
 0x7d3   :  { %v482_v9 = vmul.f32 %v2436_v59, %v480_v6 }
 0x7d5   :  { %v484_v12 = vrot.slane %v482_v9, 4  ;;  %v1017_v14 = vsel %vm1016_vm4, %v1015_v10, %v482_v9 }
 0x7d7   :  { %485 = vrot.lane.b32.xlu1 %v484_v12, %s2637_s3 }
 0x849   :  { %v486_v15 = vpop.permute.xlu1 %485 }
 0x84a   :  { %2249 = vmatmul.mubr.msk.f32.vlgmr.msra.gmra.mxu0 %vm171_vm2, %v486_v15 }
 0x84b   :  { %2263 = vmatpush3.msra.mxu0 %v2704_v2  ;;  %2270 = vmatprep.mubr.msk.f32.mxu0 %vm2635_vm0, %v2634_v0 }
 0x84c   :  { %2264 = vmatprep.subr.mxu0 %v2634_v0 }
 0x84d   :  { %2265 = vmatpush3.msra.mxu0 %v2710_v4 }
 0x84e   :  { %2266 = vmatprep.subr.mxu0 %v2634_v0 }
 0x84f   :  { %2267 = vmatpush3.msra.mxu0 %v2723_v7 }
 0x850   :  { %2268 = vmatprep.subr.mxu0 %v2634_v0 }
 0x851   :  { %2269 = vmatpush3.msra.mxu0 %v2729_v8 }
 0x852   :  { %2284 = vmatprep.subr.mxu0 %v2634_v0 }
 0x90a   :  { %v555_v16 = vpop.f32.mrf.mxu0 }
 0x90b   :  { %v560_v17 = vrot.slane %v555_v16, 2 }
 0x90c   :  { %v2250_v18 = vpop.f32.mrf.mxu0 }
 0x90d   :  { %v562_v19 = vadd.f32 %v560_v17, %v2762_v13 }
 0x90f   :  { %2439 = vtanh.f32 %v562_v19  ;;  %v2076_v21 = vmul.f32 -1.442695, %v562_v19 }
 0x911   :  { %2441 = vpow2.f32 %v2076_v21 }
 0x91c   :  { %v2440_v20 = vpop.eup %2439 }
 0x91d   :  { %575 = vrot.lane.b32.xlu0 %v2440_v20, %s2636_s14 }
 0x91e   :  { %v2442_v22 = vpop.eup %2441 }
 0x91f   :  { %v566_v23 = vadd.f32 1.0, %v2442_v22 }
 0x921   :  { %2443 = vrcp.f32 %v566_v23 }
 0x92e   :  { %v2444_v24 = vpop.eup %2443 }
 0x92f   :  { %v573_v28 = vmul.f32 %v2444_v24, %v571_v27 }
 0x98f   :  { %v576_v25 = vpop.permute.xlu0 %575 }
 0x990   :  { %v578_v26 = vmul.f32 %v2444_v24, %v576_v25 }
 0x992   :  { %580 = vrot.lane.b32.xlu1 %v578_v26, %s2637_s3 }
 0xa04   :  { %v581_v29 = vpop.permute.xlu1 %580 }
 0xa05   :  { %v583_v30 = vadd.f32 %v581_v29, %v573_v28 }
 0xa07   :  { %2445 = vtanh.f32 %v583_v30  ;;  %v675_v46 = vrot.slane %v583_v30, 6 }
 0xa14   :  { %v2446_v13 = vpop.eup %2445 }
 0xa15   :  { %586 = vrot.lane.b32.xlu0 %v2446_v13, %s2636_s14 }
 0xa87   :  { %v587_v31 = vpop.permute.xlu0 %586 }
 0xa88   :  { %v589_v32 = vmul.f32 %v2444_v24, %v587_v31 }
 0xa8a   :  { %v591_v33 = vrot.slane %v589_v32, 6  ;;  %v2823_v34 = vsel %vm1018_vm5, %v1017_v14, %v589_v32 }
 0xa8c   :  { %592 = vrot.lane.b32.xlu1 %v591_v33, %s2637_s3 }
 0xafe   :  { %v593_v35 = vpop.permute.xlu1 %592 }
 0xaff   :  { %2260 = vmatmul.mubr.msk.f32.vlgmr.msra.gmra.mxu1 %vm171_vm2, %v593_v35 }
 0xb00   :  { %2274 = vmatpush3.msra.mxu1 %v2704_v2  ;;  %2281 = vmatprep.mubr.msk.f32.mxu1 %vm2635_vm0, %v2634_v0 }
 0xb01   :  { %2275 = vmatprep.subr.mxu1 %v2634_v0 }
 0xb02   :  { %2276 = vmatpush3.msra.mxu1 %v2710_v4 }
 0xb03   :  { %2277 = vmatprep.subr.mxu1 %v2634_v0 }
 0xb04   :  { %2278 = vmatpush3.msra.mxu1 %v2723_v7 }
 0xb05   :  { %2279 = vmatprep.subr.mxu1 %v2634_v0 }
 0xb06   :  { %2280 = vmatpush3.msra.mxu1 %v2729_v8 }
 0xbbf   :  { %v662_v36 = vpop.f32.mrf.mxu1 }
 0xbc0   :  { %v666_v37 = vadd.f32 %v662_v36, %v2760_v11 }
 0xbc1   :  { %v2261_v38 = vpop.f32.mrf.mxu1 }
 0xbc2   :  { %2447 = vtanh.f32 %v666_v37  ;;  %v2078_v40 = vmul.f32 -1.442695, %v666_v37 }
 0xbc4   :  { %2449 = vpow2.f32 %v2078_v40 }
 0xbcf   :  { %v2448_v39 = vpop.eup %2447 }
 0xbd0   :  { %679 = vrot.lane.b32.xlu0 %v2448_v39, %s2636_s14 }
 0xbd1   :  { %v2450_v41 = vpop.eup %2449 }
 0xbd2   :  { %v670_v42 = vadd.f32 1.0, %v2450_v41 }
 0xbd4   :  { %2451 = vrcp.f32 %v670_v42 }
 0xbe1   :  { %v2452_v43 = vpop.eup %2451 }
 0xbe2   :  { %v677_v47 = vmul.f32 %v2452_v43, %v675_v46 }
 0xc42   :  { %v680_v44 = vpop.permute.xlu0 %679 }
 0xc43   :  { %v682_v45 = vmul.f32 %v2452_v43, %v680_v44 }
 0xc45   :  { %684 = vrot.lane.b32.xlu1 %v682_v45, %s2637_s3 }
 0xcb7   :  { %v685_v48 = vpop.permute.xlu1 %684 }
 0xcb8   :  { %v687_v49 = vadd.f32 %v685_v48, %v677_v47 }
 0xcba   :  { %2453 = vtanh.f32 %v687_v49 }
 0xcc7   :  { %v2454_v50 = vpop.eup %2453 }
 0xcc8   :  { %690 = vrot.lane.b32.xlu0 %v2454_v50, %s2636_s14  ;;  %v1026_v50 = vld [vmem:[#allocation5 + $0x18] sm:$0xff] }
 0xcc9   :  { %2295 = vmatprep.subr.mxu1 %v1026_v50 }
 0xd3a   :  { %v691_v51 = vpop.permute.xlu0 %690 }
 0xd3b   :  { %v2840_v52 = vmul.f32 %v2452_v43, %v691_v51  ;;  %v1025_v51 = vld [vmem:[#allocation5 + $0x10] sm:$0xff] }
 0xd3d   :  { %695 = vrot.lane.b32.xlu1 %v2840_v52, %s2637_s3 }
 0xdaf   :  { %v696_v53 = vpop.permute.xlu1 %695 }
 0xdb0   :  { %2271 = vmatmul.mubr.msk.f32.vlgmr.msra.gmra.mxu0 %vm171_vm2, %v696_v53  ;;  %v2883_v53 = vld [vmem:[#allocation7 + $0x10] sm:$0xff] }
 0xdb1   :  { %2285 = vmatpush3.msra.mxu0 %v2704_v2  ;;  %2292 = vmatprep.mubr.msk.f32.mxu0 %vm2635_vm0, %v2634_v0 }
 0xdb2   :  { %2286 = vmatprep.subr.mxu0 %v2634_v0 }
 0xdb3   :  { %2287 = vmatpush3.msra.mxu0 %v2710_v4 }
 0xdb4   :  { %2288 = vmatprep.subr.mxu0 %v2634_v0 }
 0xdb5   :  { %2289 = vmatpush3.msra.mxu0 %v2723_v7 }
 0xdb6   :  { %2290 = vmatprep.subr.mxu0 %v2634_v0 }
 0xdb7   :  { %2291 = vmatpush3.msra.mxu0 %v2729_v8  ;;  %v781_v8 = vrot.slane %v687_v49, 6 }
 0xdb8   :  { %2306 = vmatprep.subr.mxu0 %v2634_v0 }
 0xe70   :  { %v765_v54 = vpop.f32.mrf.mxu0 }
 0xe71   :  { %v770_v55 = vrot.slane %v765_v54, 6  ;;  %v1024_v54 = vld [vmem:[#allocation5 + $0x8] sm:$0xff] }
 0xe72   :  { %v2272_v2 = vpop.f32.mrf.mxu0 }
 0xe73   :  { %v772_v56 = vadd.f32 %v770_v55, %v2760_v11  ;;  %v1023_v55 = vld [vmem:[#allocation5] sm:$0xff] }
 0xe75   :  { %2455 = vtanh.f32 %v772_v56  ;;  %v2080_v4 = vmul.f32 -1.442695, %v772_v56  ;;  %v2894_v56 = vld [vmem:[#allocation7] sm:$0xff] }
 0xe77   :  { %2457 = vpow2.f32 %v2080_v4 }
 0xe82   :  { %v2456_v57 = vpop.eup %2455 }
 0xe83   :  { %785 = vrot.lane.b32.xlu0 %v2456_v57, %s2636_s14 }
 0xe84   :  { %v2458_v58 = vpop.eup %2457 }
 0xe85   :  { %v776_v59 = vadd.f32 1.0, %v2458_v58 }
 0xe87   :  { %2459 = vrcp.f32 %v776_v59 }
 0xe94   :  { %v2460_v7 = vpop.eup %2459 }
 0xe95   :  { %v783_v62 = vmul.f32 %v2460_v7, %v781_v8 }
 0xef5   :  { %v786_v60 = vpop.permute.xlu0 %785 }
 0xef6   :  { %v788_v61 = vmul.f32 %v2460_v7, %v786_v60 }
 0xef8   :  { %790 = vrot.lane.b32.xlu1 %v788_v61, %s2637_s3  ;;  %v2085_v61 = vld [vmem:[%s3056_s6] ss:$0 sm:$0xff] }
 0xf6a   :  { %v791_v63 = vpop.permute.xlu1 %790 }
 0xf6b   :  { %v793_v1 = vadd.f32 %v791_v63, %v783_v62 }
 0xf6d   :  { %2461 = vtanh.f32 %v793_v1  ;;  %v888_v24 = vrot.slane %v793_v1, 6 }
 0xf7a   :  { %v2462_v3 = vpop.eup %2461 }
 0xf7b   :  { %796 = vrot.lane.b32.xlu0 %v2462_v3, %s2636_s14 }
 0xfed   :  { %v797_v5 = vpop.permute.xlu0 %796 }
 0xfee   :  { %v799_v6 = vmul.f32 %v2460_v7, %v797_v5 }
 0xff0   :  { %v801_v9 = vrot.slane %v799_v6, 2  ;;  %v1020_v13 = vsel %vm1014_vm3, %v2840_v52, %v799_v6  ;;  %v2880_v52 = vld [vmem:[#allocation7 + $0x18] sm:$0xff] }
 0xff2   :  { %802 = vrot.lane.b32.xlu1 %v801_v9, %s2637_s3 }
0x1064   :  { %v803_v10 = vpop.permute.xlu1 %802 }
0x1065   :  { %2282 = vmatmul.mubr.msk.f32.vlgmr.msra.gmra.mxu1 %vm171_vm2, %v803_v10 }
0x1066   :  { %2296 = vmatpush3.msra.mxu1 %v1026_v50 }
0x1067   :  { %2297 = vmatprep.subr.mxu1 %v1025_v51 }
0x1068   :  { %2298 = vmatpush3.msra.mxu1 %v1025_v51 }
0x1069   :  { %2299 = vmatprep.subr.mxu1 %v1024_v54 }
0x106a   :  { %2300 = vmatpush3.msra.mxu1 %v1024_v54 }
0x106b   :  { %2301 = vmatprep.subr.mxu1 %v1023_v55 }
0x106c   :  { %2302 = vmatpush3.msra.mxu1 %v1023_v55 }
0x106d   :  { %2317 = vmatprep.subr.mxu1 %v2634_v0 }
0x1125   :  { %v872_v12 = vpop.f32.mrf.mxu1 }
0x1126   :  { %v877_v14 = vrot.slane %v872_v12, 4 }
0x1127   :  { %v2283_v15 = vpop.f32.mrf.mxu1 }
0x1128   :  { %v879_v16 = vadd.f32 %v877_v14, %v2760_v11 }
0x112a   :  { %2463 = vtanh.f32 %v879_v16  ;;  %v2082_v18 = vmul.f32 -1.442695, %v879_v16 }
0x112c   :  { %2465 = vpow2.f32 %v2082_v18 }
0x1137   :  { %v2464_v17 = vpop.eup %2463 }
0x1138   :  { %892 = vrot.lane.b32.xlu0 %v2464_v17, %s2636_s14 }
0x1139   :  { %v2466_v19 = vpop.eup %2465 }
0x113a   :  { %v883_v20 = vadd.f32 1.0, %v2466_v19 }
0x113c   :  { %2467 = vrcp.f32 %v883_v20 }
0x1149   :  { %v2468_v21 = vpop.eup %2467 }
0x114a   :  { %v890_v25 = vmul.f32 %v2468_v21, %v888_v24 }
0x11aa   :  { %v893_v22 = vpop.permute.xlu0 %892 }
0x11ab   :  { %v895_v23 = vmul.f32 %v2468_v21, %v893_v22 }
0x11ad   :  { %897 = vrot.lane.b32.xlu1 %v895_v23, %s2637_s3 }
0x121f   :  { %v898_v26 = vpop.permute.xlu1 %897 }
0x1220   :  { %v900_v27 = vadd.f32 %v898_v26, %v890_v25 }
0x1222   :  { %2469 = vtanh.f32 %v900_v27  ;;  %v995_v46 = vrot.slane %v900_v27, 6 }
0x122f   :  { %v2470_v28 = vpop.eup %2469 }
0x1230   :  { %903 = vrot.lane.b32.xlu0 %v2470_v28, %s2636_s14 }
0x12a2   :  { %v904_v29 = vpop.permute.xlu0 %903 }
0x12a3   :  { %v906_v30 = vmul.f32 %v2468_v21, %v904_v29 }
0x12a5   :  { %v908_v31 = vrot.slane %v906_v30, 4  ;;  %v2868_v32 = vsel %vm1016_vm4, %v1020_v13, %v906_v30 }
0x12a7   :  { %909 = vrot.lane.b32.xlu1 %v908_v31, %s2637_s3 }
0x1319   :  { %v910_v33 = vpop.permute.xlu1 %909 }
0x131a   :  { %2293 = vmatmul.mubr.msk.f32.vlgmr.msra.gmra.mxu0 %vm171_vm2, %v910_v33 }
0x131b   :  { %2314 = vmatprep.mubr.msk.f32.mxu0 %vm2635_vm0, %v2634_v0  ;;  %2307 = vmatpush3.msra.mxu0 %v2880_v52 }
0x131c   :  { %2308 = vmatprep.subr.mxu0 %v2634_v0 }
0x131d   :  { %2309 = vmatpush3.msra.mxu0 %v2883_v53 }
0x131e   :  { %2310 = vmatprep.subr.mxu0 %v2634_v0 }
0x13da   :  { %v979_v35 = vpop.f32.mrf.mxu0 }
0x13db   :  { %v984_v36 = vrot.slane %v979_v35, 2 }
0x13dc   :  { %v2294_v37 = vpop.f32.mrf.mxu0 }
0x13dd   :  { %v986_v38 = vadd.f32 %v984_v36, %v2760_v11 }
0x13df   :  { %2471 = vtanh.f32 %v986_v38  ;;  %v2084_v40 = vmul.f32 -1.442695, %v986_v38 }
0x13e1   :  { %2473 = vpow2.f32 %v2084_v40 }
0x13ec   :  { %v2472_v39 = vpop.eup %2471 }
0x13ed   :  { %999 = vrot.lane.b32.xlu0 %v2472_v39, %s2636_s14 }
0x13ee   :  { %v2474_v41 = vpop.eup %2473 }
0x13ef   :  { %v990_v42 = vadd.f32 1.0, %v2474_v41 }
0x13f1   :  { %2475 = vrcp.f32 %v990_v42 }
0x13fe   :  { %v2476_v43 = vpop.eup %2475 }
0x13ff   :  { %v997_v47 = vmul.f32 %v2476_v43, %v995_v46 }
0x145f   :  { %v1000_v44 = vpop.permute.xlu0 %999 }
0x1460   :  { %v1002_v45 = vmul.f32 %v2476_v43, %v1000_v44 }
0x1462   :  { %1004 = vrot.lane.b32.xlu1 %v1002_v45, %s2637_s3 }
0x1466   :  { %1040 = vrot.lane.b32.xlu1 %v2823_v34, %s2637_s3  ;;  %v2886_v34 = vld [vmem:[#allocation7 + $0x8] sm:$0xff] }
0x1467   :  { %2311 = vmatpush3.msra.mxu0 %v2886_v34 }
0x1468   :  { %2312 = vmatprep.subr.mxu0 %v2634_v0 }
0x1469   :  { %2313 = vmatpush3.msra.mxu0 %v2894_v56 }
0x146a   :  { %2315 = vmatmul.mubr.f32.vlgmr.msra.gmra.mxu0 %v2634_v0  ;;  %2328 = vmatprep.subr.mxu0 %v2634_v0 }
0x146b   :  { %2329 = vmatpush3.msra.mxu0 %v2880_v52  ;;  %2336 = vmatprep.mubr.msk.f32.mxu0 %vm2635_vm0, %v2634_v0 }
0x146c   :  { %2330 = vmatprep.subr.mxu0 %v2634_v0 }
0x146d   :  { %2331 = vmatpush3.msra.mxu0 %v2883_v53 }
0x146e   :  { %2332 = vmatprep.subr.mxu0 %v2634_v0 }
0x146f   :  { %2333 = vmatpush3.msra.mxu0 %v2886_v34 }
0x1470   :  { %2334 = vmatprep.subr.mxu0 %v2634_v0 }
0x1471   :  { %2335 = vmatpush3.msra.mxu0 %v2894_v56 }
0x1472   :  { %2350 = vmatprep.subr.mxu0 %v2634_v0 }
0x14d4   :  { %v1005_v11 = vpop.permute.xlu1 %1004 }
0x14d5   :  { %v1007_v48 = vadd.f32 %v1005_v11, %v997_v47 }
0x14d7   :  { %2477 = vtanh.f32 %v1007_v48 }
0x14d8   :  { %v1041_v49 = vpop.permute.xlu1 %1040 }
0x14d9   :  { %2303 = vmatprep.mubr.msk.f32.mxu1 %vm171_vm2, %v1041_v49 }
0x14e4   :  { %v2478_v2 = vpop.eup %2477 }
0x14e5   :  { %1010 = vrot.lane.b32.xlu0 %v2478_v2, %s2636_s14 }
0x152a   :  { %v1189_v7 = vpop.f32.mrf.mxu0 }
0x152c   :  { %v2316_v60 = vpop.f32.mrf.mxu0 }
0x1557   :  { %v1011_v57 = vpop.permute.xlu0 %1010 }
0x1558   :  { %v1013_v4 = vmul.f32 %v2476_v43, %v1011_v57 }
0x155a   :  { %v1022_v58 = vsel %vm1018_vm5, %v2868_v32, %v1013_v4 }
0x155b   :  { %1042 = vrot.lane.b32.xlu0 %v1022_v58, %s2637_s3 }
0x15cd   :  { %v1043_v59 = vpop.permute.xlu0 %1042 }
0x15ce   :  { %2304 = vmatmul.mubr.msk.f32.vlgmr.msra.gmra.mxu1 %vm171_vm2, %v1043_v59 }
0x15cf   :  { %2318 = vmatpush3.msra.mxu1 %v2880_v52  ;;  %2325 = vmatprep.mubr.msk.f32.mxu1 %vm2635_vm0, %v2634_v0 }
0x15d0   :  { %2319 = vmatprep.subr.mxu1 %v2634_v0 }
0x15d1   :  { %2320 = vmatpush3.msra.mxu1 %v2883_v53 }
0x15d2   :  { %2321 = vmatprep.subr.mxu1 %v2634_v0 }
0x15d3   :  { %2322 = vmatpush3.msra.mxu1 %v2886_v34 }
0x15d4   :  { %2323 = vmatprep.subr.mxu1 %v2634_v0 }
0x15d5   :  { %2324 = vmatpush3.msra.mxu1 %v2894_v56 }
0x15d6   :  { %2339 = vmatprep.subr.mxu1 %v2634_v0 }
0x168e   :  { %v2305_v8 = vpop.f32.mrf.mxu1 }
0x168f   :  { %v2926_v62 = vadd.f32 %v2305_v8, %v2085_v61 }
0x1690   :  { %v1114_v63 = vpop.f32.mrf.mxu1 }
0x1691   :  { %v2928_v1 = vadd.f32 %v2085_v61, %v1114_v63 }
0x1693   :  { %v1193_v3 = vadd.f32 %v1189_v7, %v2928_v1 }
0x1695   :  { %2479 = vtanh.f32 %v1193_v3  ;;  %v2088_v6 = vmul.f32 -1.442695, %v1193_v3 }
0x1697   :  { %2481 = vpow2.f32 %v2088_v6 }
0x16a2   :  { %v2480_v5 = vpop.eup %2479 }
0x16a3   :  { %1203 = vrot.lane.b32.xlu1 %v2480_v5, %s2636_s14 }
0x16a4   :  { %v2482_v9 = vpop.eup %2481 }
0x16a5   :  { %v1197_v10 = vadd.f32 1.0, %v2482_v9 }
0x16a7   :  { %2483 = vrcp.f32 %v1197_v10 }
0x16b4   :  { %v2484_v12 = vpop.eup %2483 }
0x16b5   :  { %v1201_v16 = vmul.f32 0.0, %v2484_v12 }
0x1715   :  { %v1204_v14 = vpop.permute.xlu1 %1203 }
0x1716   :  { %v1206_v15 = vmul.f32 %v2484_v12, %v1204_v14 }
0x1718   :  { %1208 = vrot.lane.b32.xlu0 %v1206_v15, %s2637_s3 }
0x178a   :  { %v1209_v17 = vpop.permute.xlu0 %1208 }
0x178b   :  { %v1211_v18 = vadd.f32 %v1209_v17, %v1201_v16 }
0x178d   :  { %2485 = vtanh.f32 %v1211_v18  ;;  %v1305_v33 = vrot.slane %v1211_v18, 6 }
0x179a   :  { %v2486_v19 = vpop.eup %2485 }
0x179b   :  { %1214 = vrot.lane.b32.xlu1 %v2486_v19, %s2636_s14 }
0x180d   :  { %v1215_v20 = vpop.permute.xlu1 %1214 }
0x180e   :  { %v1217_v21 = vmul.f32 %v2484_v12, %v1215_v20 }
0x1810   :  { %1219 = vrot.lane.b32.xlu0 %v1217_v21, %s2637_s3 }
0x1882   :  { %v1220_v22 = vpop.permute.xlu0 %1219 }
0x1883   :  { %2326 = vmatmul.mubr.msk.f32.vlgmr.msra.gmra.mxu1 %vm171_vm2, %v1220_v22 }
0x1884   :  { %2340 = vmatpush3.msra.mxu1 %v2880_v52  ;;  %2347 = vmatprep.mubr.msk.f32.mxu1 %vm2635_vm0, %v2634_v0 }
0x1885   :  { %2341 = vmatprep.subr.mxu1 %v2634_v0 }
0x1886   :  { %2342 = vmatpush3.msra.mxu1 %v2883_v53 }
0x1887   :  { %2343 = vmatprep.subr.mxu1 %v2634_v0 }
0x1888   :  { %2344 = vmatpush3.msra.mxu1 %v2886_v34 }
0x1889   :  { %2345 = vmatprep.subr.mxu1 %v2634_v0 }
0x188a   :  { %2346 = vmatpush3.msra.mxu1 %v2894_v56 }
0x188b   :  { %2361 = vmatprep.subr.mxu1 %v2634_v0 }
0x1943   :  { %v1289_v23 = vpop.f32.mrf.mxu1 }
0x1944   :  { %v1294_v24 = vrot.slane %v1289_v23, 6 }
0x1945   :  { %v2327_v25 = vpop.f32.mrf.mxu1 }
0x1946   :  { %v1296_v26 = vadd.f32 %v1294_v24, %v2928_v1 }
0x1948   :  { %2487 = vtanh.f32 %v1296_v26  ;;  %v2090_v28 = vmul.f32 -1.442695, %v1296_v26 }
0x194a   :  { %2489 = vpow2.f32 %v2090_v28 }
0x1955   :  { %v2488_v27 = vpop.eup %2487 }
0x1956   :  { %1309 = vrot.lane.b32.xlu1 %v2488_v27, %s2636_s14 }
0x1957   :  { %v2490_v29 = vpop.eup %2489 }
0x1958   :  { %v1300_v30 = vadd.f32 1.0, %v2490_v29 }
0x195a   :  { %2491 = vrcp.f32 %v1300_v30 }
0x1967   :  { %v2492_v13 = vpop.eup %2491 }
0x1968   :  { %v1307_v35 = vmul.f32 %v2492_v13, %v1305_v33 }
0x19c8   :  { %v1310_v31 = vpop.permute.xlu1 %1309 }
0x19c9   :  { %v1312_v32 = vmul.f32 %v2492_v13, %v1310_v31 }
0x19cb   :  { %1314 = vrot.lane.b32.xlu0 %v1312_v32, %s2637_s3 }
0x1a3d   :  { %v1315_v36 = vpop.permute.xlu0 %1314 }
0x1a3e   :  { %v1317_v37 = vadd.f32 %v1315_v36, %v1307_v35 }
0x1a40   :  { %2493 = vtanh.f32 %v1317_v37  ;;  %v1412_v55 = vrot.slane %v1317_v37, 6 }
0x1a4d   :  { %v2494_v38 = vpop.eup %2493 }
0x1a4e   :  { %1320 = vrot.lane.b32.xlu1 %v2494_v38, %s2636_s14 }
0x1ac0   :  { %v1321_v39 = vpop.permute.xlu1 %1320 }
0x1ac1   :  { %v1323_v40 = vmul.f32 %v2492_v13, %v1321_v39 }
0x1ac3   :  { %v1325_v41 = vrot.slane %v1323_v40, 2 }
0x1ac5   :  { %1326 = vrot.lane.b32.xlu0 %v1325_v41, %s2637_s3 }
0x1b37   :  { %v1327_v42 = vpop.permute.xlu0 %1326 }
0x1b38   :  { %2337 = vmatmul.mubr.msk.f32.vlgmr.msra.gmra.mxu0 %vm171_vm2, %v1327_v42 }
0x1b39   :  { %2351 = vmatpush3.msra.mxu0 %v2880_v52  ;;  %2358 = vmatprep.mubr.msk.f32.mxu0 %vm2635_vm0, %v2634_v0 }
0x1b3a   :  { %2352 = vmatprep.subr.mxu0 %v2634_v0 }
0x1b3b   :  { %2353 = vmatpush3.msra.mxu0 %v2883_v53 }
0x1b3c   :  { %2354 = vmatprep.subr.mxu0 %v2634_v0 }
0x1b3d   :  { %2355 = vmatpush3.msra.mxu0 %v2886_v34 }
0x1b3e   :  { %2356 = vmatprep.subr.mxu0 %v2634_v0 }
0x1b3f   :  { %2357 = vmatpush3.msra.mxu0 %v2894_v56 }
0x1b40   :  { %2372 = vmatprep.subr.mxu0 %v2634_v0 }
0x1bf8   :  { %v1396_v43 = vpop.f32.mrf.mxu0 }
0x1bf9   :  { %v1401_v44 = vrot.slane %v1396_v43, 4 }
0x1bfa   :  { %v2338_v45 = vpop.f32.mrf.mxu0 }
0x1bfb   :  { %v1403_v46 = vadd.f32 %v1401_v44, %v2928_v1 }
0x1bfd   :  { %2495 = vtanh.f32 %v1403_v46  ;;  %v2092_v11 = vmul.f32 -1.442695, %v1403_v46 }
0x1bff   :  { %2497 = vpow2.f32 %v2092_v11 }
0x1c0a   :  { %v2496_v47 = vpop.eup %2495 }
0x1c0b   :  { %1416 = vrot.lane.b32.xlu1 %v2496_v47, %s2636_s14 }
0x1c0c   :  { %v2498_v48 = vpop.eup %2497 }
0x1c0d   :  { %v1407_v49 = vadd.f32 1.0, %v2498_v48 }
0x1c0f   :  { %2499 = vrcp.f32 %v1407_v49 }
0x1c1c   :  { %v2500_v50 = vpop.eup %2499 }
0x1c1d   :  { %v1414_v2 = vmul.f32 %v2500_v50, %v1412_v55 }
0x1c7d   :  { %v1417_v51 = vpop.permute.xlu1 %1416 }
0x1c7e   :  { %v1419_v54 = vmul.f32 %v2500_v50, %v1417_v51 }
0x1c80   :  { %1421 = vrot.lane.b32.xlu0 %v1419_v54, %s2637_s3 }
0x1cf2   :  { %v1422_v57 = vpop.permute.xlu0 %1421 }
0x1cf3   :  { %v1424_v4 = vadd.f32 %v1422_v57, %v1414_v2 }
0x1cf5   :  { %2501 = vtanh.f32 %v1424_v4  ;;  %v1519_v17 = vrot.slane %v1424_v4, 6 }
0x1d02   :  { %v2502_v58 = vpop.eup %2501 }
0x1d03   :  { %1427 = vrot.lane.b32.xlu1 %v2502_v58, %s2636_s14 }
0x1d75   :  { %v1428_v59 = vpop.permute.xlu1 %1427 }
0x1d76   :  { %v1430_v7 = vmul.f32 %v2500_v50, %v1428_v59 }
0x1d78   :  { %v1432_v60 = vrot.slane %v1430_v7, 4 }
0x1d7a   :  { %1433 = vrot.lane.b32.xlu0 %v1432_v60, %s2637_s3 }
0x1dec   :  { %v1434_v61 = vpop.permute.xlu0 %1433 }
0x1ded   :  { %2348 = vmatmul.mubr.msk.f32.vlgmr.msra.gmra.mxu1 %vm171_vm2, %v1434_v61 }
0x1dee   :  { %2362 = vmatpush3.msra.mxu1 %v2880_v52  ;;  %2369 = vmatprep.mubr.msk.f32.mxu1 %vm2635_vm0, %v2634_v0 }
0x1def   :  { %2363 = vmatprep.subr.mxu1 %v2634_v0 }
0x1df0   :  { %2364 = vmatpush3.msra.mxu1 %v2883_v53 }
0x1df1   :  { %2365 = vmatprep.subr.mxu1 %v2634_v0 }
0x1df2   :  { %2366 = vmatpush3.msra.mxu1 %v2886_v34 }
0x1df3   :  { %2367 = vmatprep.subr.mxu1 %v2634_v0 }
0x1df4   :  { %2368 = vmatpush3.msra.mxu1 %v2894_v56 }
0x1df5   :  { %2383 = vmatprep.subr.mxu1 %v2634_v0 }
0x1ead   :  { %v1503_v8 = vpop.f32.mrf.mxu1 }
0x1eae   :  { %v1508_v63 = vrot.slane %v1503_v8, 2 }
0x1eaf   :  { %v2349_v3 = vpop.f32.mrf.mxu1 }
0x1eb0   :  { %v1510_v5 = vadd.f32 %v1508_v63, %v2928_v1 }
0x1eb2   :  { %2503 = vtanh.f32 %v1510_v5  ;;  %v2094_v9 = vmul.f32 -1.442695, %v1510_v5 }
0x1eb4   :  { %2505 = vpow2.f32 %v2094_v9 }
0x1ebf   :  { %v2504_v6 = vpop.eup %2503 }
0x1ec0   :  { %1523 = vrot.lane.b32.xlu1 %v2504_v6, %s2636_s14 }
0x1ec1   :  { %v2506_v10 = vpop.eup %2505 }
0x1ec2   :  { %v1514_v12 = vadd.f32 1.0, %v2506_v10 }
0x1ec4   :  { %2507 = vrcp.f32 %v1514_v12 }
0x1ed1   :  { %v2508_v14 = vpop.eup %2507 }
0x1ed2   :  { %v1521_v18 = vmul.f32 %v2508_v14, %v1519_v17 }
0x1f32   :  { %v1524_v15 = vpop.permute.xlu1 %1523 }
0x1f33   :  { %v1526_v16 = vmul.f32 %v2508_v14, %v1524_v15 }
0x1f35   :  { %1528 = vrot.lane.b32.xlu0 %v1526_v16, %s2637_s3 }
0x1fa7   :  { %v1529_v19 = vpop.permute.xlu0 %1528 }
0x1fa8   :  { %v1531_v20 = vadd.f32 %v1529_v19, %v1521_v18 }
0x1faa   :  { %2509 = vtanh.f32 %v1531_v20  ;;  %v1623_v35 = vrot.slane %v1531_v20, 6 }
0x1fb7   :  { %v2510_v1 = vpop.eup %2509 }
0x1fb8   :  { %1534 = vrot.lane.b32.xlu1 %v2510_v1, %s2636_s14 }
0x202a   :  { %v1535_v21 = vpop.permute.xlu1 %1534 }
0x202b   :  { %v1537_v22 = vmul.f32 %v2508_v14, %v1535_v21 }
0x202d   :  { %v1539_v23 = vrot.slane %v1537_v22, 6 }
0x202f   :  { %1540 = vrot.lane.b32.xlu0 %v1539_v23, %s2637_s3 }
0x20a1   :  { %v1541_v24 = vpop.permute.xlu0 %1540 }
0x20a2   :  { %2359 = vmatmul.mubr.msk.f32.vlgmr.msra.gmra.mxu0 %vm171_vm2, %v1541_v24 }
0x20a3   :  { %2373 = vmatpush3.msra.mxu0 %v2880_v52  ;;  %2380 = vmatprep.mubr.msk.f32.mxu0 %vm2635_vm0, %v2634_v0 }
0x20a4   :  { %2374 = vmatprep.subr.mxu0 %v2634_v0 }
0x20a5   :  { %2375 = vmatpush3.msra.mxu0 %v2883_v53 }
0x20a6   :  { %2376 = vmatprep.subr.mxu0 %v2634_v0 }
0x20a7   :  { %2377 = vmatpush3.msra.mxu0 %v2886_v34 }
0x20a8   :  { %2378 = vmatprep.subr.mxu0 %v2634_v0 }
0x20a9   :  { %2379 = vmatpush3.msra.mxu0 %v2894_v56 }
0x20aa   :  { %2394 = vmatprep.subr.mxu0 %v2634_v0 }
0x2162   :  { %v1610_v25 = vpop.f32.mrf.mxu0 }
0x2163   :  { %v1614_v26 = vadd.f32 %v1610_v25, %v2926_v62 }
0x2164   :  { %v2360_v27 = vpop.f32.mrf.mxu0 }
0x2165   :  { %2511 = vtanh.f32 %v1614_v26  ;;  %v2096_v29 = vmul.f32 -1.442695, %v1614_v26 }
0x2167   :  { %2513 = vpow2.f32 %v2096_v29 }
0x2172   :  { %v2512_v28 = vpop.eup %2511 }
0x2173   :  { %1627 = vrot.lane.b32.xlu1 %v2512_v28, %s2636_s14 }
0x2174   :  { %v2514_v30 = vpop.eup %2513 }
0x2175   :  { %v1618_v13 = vadd.f32 1.0, %v2514_v30 }
0x2177   :  { %2515 = vrcp.f32 %v1618_v13 }
0x2184   :  { %v2516_v31 = vpop.eup %2515 }
0x2185   :  { %v1625_v36 = vmul.f32 %v2516_v31, %v1623_v35 }
0x21e5   :  { %v1628_v32 = vpop.permute.xlu1 %1627 }
0x21e6   :  { %v1630_v33 = vmul.f32 %v2516_v31, %v1628_v32 }
0x21e8   :  { %1632 = vrot.lane.b32.xlu0 %v1630_v33, %s2637_s3 }
0x225a   :  { %v1633_v37 = vpop.permute.xlu0 %1632 }
0x225b   :  { %v1635_v38 = vadd.f32 %v1633_v37, %v1625_v36  ;;  %v1964_v36 = vld [vmem:[%s3057_s7 + $0x10] sm:$0xff]  ;;  %v1963_v37 = vld [vmem:[%s3057_s7 + $0x8] sm:$0xff] }
0x225d   :  { %2517 = vtanh.f32 %v1635_v38 }
0x226a   :  { %v2518_v39 = vpop.eup %2517 }
0x226b   :  { %1638 = vrot.lane.b32.xlu1 %v2518_v39, %s2636_s14 }
0x22dd   :  { %v1639_v40 = vpop.permute.xlu1 %1638 }
0x22de   :  { %v1641_v41 = vmul.f32 %v2516_v31, %v1639_v40 }
0x22e0   :  { %1643 = vrot.lane.b32.xlu0 %v1641_v41, %s2637_s3 }
0x2352   :  { %v1644_v42 = vpop.permute.xlu0 %1643 }
0x2353   :  { %2370 = vmatmul.mubr.msk.f32.vlgmr.msra.gmra.mxu1 %vm171_vm2, %v1644_v42 }
0x2354   :  { %2384 = vmatpush3.msra.mxu1 %v2880_v52  ;;  %2391 = vmatprep.mubr.msk.f32.mxu1 %vm2635_vm0, %v2634_v0 }
0x2355   :  { %2385 = vmatprep.subr.mxu1 %v2634_v0 }
0x2356   :  { %2386 = vmatpush3.msra.mxu1 %v2883_v53 }
0x2357   :  { %2387 = vmatprep.subr.mxu1 %v2634_v0 }
0x2358   :  { %2388 = vmatpush3.msra.mxu1 %v2886_v34 }
0x2359   :  { %2389 = vmatprep.subr.mxu1 %v2634_v0 }
0x235a   :  { %2390 = vmatpush3.msra.mxu1 %v2894_v56  ;;  %v1729_v56 = vrot.slane %v1635_v38, 6  ;;  %v1962_v38 = vld [vmem:[%s3057_s7] sm:$0xff] }
0x2413   :  { %v1713_v43 = vpop.f32.mrf.mxu1 }
0x2414   :  { %v1718_v44 = vrot.slane %v1713_v43, 6 }
0x2415   :  { %v2371_v45 = vpop.f32.mrf.mxu1 }
0x2416   :  { %v1720_v52 = vadd.f32 %v1718_v44, %v2926_v62  ;;  %v2103_v44 = vld [vmem:[%s3058_s8] ss:$0 sm:$0xff] }
0x2418   :  { %2519 = vtanh.f32 %v1720_v52  ;;  %v2098_v47 = vmul.f32 -1.442695, %v1720_v52 }
0x241a   :  { %2521 = vpow2.f32 %v2098_v47 }
0x2425   :  { %v2520_v46 = vpop.eup %2519 }
0x2426   :  { %1733 = vrot.lane.b32.xlu1 %v2520_v46, %s2636_s14 }
0x2427   :  { %v2522_v53 = vpop.eup %2521 }
0x2428   :  { %v1724_v11 = vadd.f32 1.0, %v2522_v53 }
0x242a   :  { %2523 = vrcp.f32 %v1724_v11 }
0x2437   :  { %v2524_v48 = vpop.eup %2523 }
0x2438   :  { %v1731_v50 = vmul.f32 %v2524_v48, %v1729_v56 }
0x2498   :  { %v1734_v34 = vpop.permute.xlu1 %1733 }
0x2499   :  { %v1736_v49 = vmul.f32 %v2524_v48, %v1734_v34 }
0x249b   :  { %1738 = vrot.lane.b32.xlu0 %v1736_v49, %s2637_s3 }
0x250d   :  { %v1739_v51 = vpop.permute.xlu0 %1738 }
0x250e   :  { %v1741_v54 = vadd.f32 %v1739_v51, %v1731_v50 }
0x2510   :  { %2525 = vtanh.f32 %v1741_v54  ;;  %v1836_v12 = vrot.slane %v1741_v54, 6 }
0x251d   :  { %v2526_v55 = vpop.eup %2525 }
0x251e   :  { %1744 = vrot.lane.b32.xlu1 %v2526_v55, %s2636_s14 }
0x2590   :  { %v1745_v2 = vpop.permute.xlu1 %1744 }
0x2591   :  { %v1747_v57 = vmul.f32 %v2524_v48, %v1745_v2 }
0x2593   :  { %v1749_v4 = vrot.slane %v1747_v57, 2 }
0x2595   :  { %1750 = vrot.lane.b32.xlu0 %v1749_v4, %s2637_s3 }
0x2607   :  { %v1751_v58 = vpop.permute.xlu0 %1750 }
0x2608   :  { %2381 = vmatmul.mubr.msk.f32.vlgmr.msra.gmra.mxu0 %vm171_vm2, %v1751_v58 }
0x2609   :  { %2402 = vmatprep.mubr.msk.f32.mxu0 %vm2635_vm0, %v2634_v0 }
0x26c8   :  { %v1820_v59 = vpop.f32.mrf.mxu0 }
0x26c9   :  { %v1825_v7 = vrot.slane %v1820_v59, 4 }
0x26ca   :  { %v2382_v60 = vpop.f32.mrf.mxu0 }
0x26cb   :  { %v1827_v61 = vadd.f32 %v1825_v7, %v2926_v62 }
0x26cd   :  { %2527 = vtanh.f32 %v1827_v61  ;;  %v2100_v63 = vmul.f32 -1.442695, %v1827_v61 }
0x26cf   :  { %2529 = vpow2.f32 %v2100_v63 }
0x26da   :  { %v2528_v8 = vpop.eup %2527 }
0x26db   :  { %1840 = vrot.lane.b32.xlu1 %v2528_v8, %s2636_s14 }
0x26dc   :  { %v2530_v3 = vpop.eup %2529 }
0x26dd   :  { %v1831_v5 = vadd.f32 1.0, %v2530_v3 }
0x26df   :  { %2531 = vrcp.f32 %v1831_v5 }
0x26ec   :  { %v2532_v6 = vpop.eup %2531 }
0x26ed   :  { %v1838_v14 = vmul.f32 %v2532_v6, %v1836_v12 }
0x274d   :  { %v1841_v9 = vpop.permute.xlu1 %1840 }
0x274e   :  { %v1843_v10 = vmul.f32 %v2532_v6, %v1841_v9 }
0x2750   :  { %1845 = vrot.lane.b32.xlu0 %v1843_v10, %s2637_s3 }
0x27c2   :  { %v1846_v15 = vpop.permute.xlu0 %1845 }
0x27c3   :  { %v1848_v16 = vadd.f32 %v1846_v15, %v1838_v14 }
0x27c5   :  { %2533 = vtanh.f32 %v1848_v16  ;;  %v1943_v31 = vrot.slane %v1848_v16, 6 }
0x27d2   :  { %v2534_v17 = vpop.eup %2533 }
0x27d3   :  { %1851 = vrot.lane.b32.xlu1 %v2534_v17, %s2636_s14 }
0x2845   :  { %v1852_v18 = vpop.permute.xlu1 %1851 }
0x2846   :  { %v1854_v19 = vmul.f32 %v2532_v6, %v1852_v18 }
0x2848   :  { %v1856_v20 = vrot.slane %v1854_v19, 4 }
0x284a   :  { %1857 = vrot.lane.b32.xlu0 %v1856_v20, %s2637_s3 }
0x28bc   :  { %v1858_v1 = vpop.permute.xlu0 %1857 }
0x28bd   :  { %2392 = vmatmul.mubr.msk.f32.vlgmr.msra.gmra.mxu1 %vm171_vm2, %v1858_v1 }
0x297d   :  { %v1927_v21 = vpop.f32.mrf.mxu1 }
0x297e   :  { %v1932_v22 = vrot.slane %v1927_v21, 2 }
0x297f   :  { %v2393_v23 = vpop.f32.mrf.mxu1 }
0x2980   :  { %v1934_v24 = vadd.f32 %v1932_v22, %v2926_v62  ;;  %v1965_v62 = vld [vmem:[%s3057_s7 + $0x18] sm:$0xff]  ;;  %s2638_s7 = smov [#allocation8]  }
0x2981   :  { %2395 = vmatpush3.msra.mxu0 %v1965_v62  ;;  %s2057_s1 = sshll.u32 %s2638_s7, 4  ;;  %s2058_s1 = int_to_ptr.vmem [resolvable:$true] %s2057_s1 }
0x2982   :  { %2535 = vtanh.f32 %v1934_v24  ;;  %v2102_v26 = vmul.f32 -1.442695, %v1934_v24  ;;  %2396 = vmatprep.subr.mxu0 %v2634_v0  ;;  %s2603_s25 = scalar_lea.vmem %s2058_s1, 32  ;;  %p2608_p2 = scmp.lt.s32.totalorder %s2058_s1, %s2058_s1 }
0x2983   :  { %2397 = vmatpush3.msra.mxu0 %v1964_v36  ;;  %p2604_p1 = scmp.ne.s32.totalorder %s2058_s1, %s2603_s25  ;;  %p2609_p3 = scmp.lt.s32.totalorder %s2603_s25, %s2603_s25 }
0x2984   :  { %2537 = vpow2.f32 %v2102_v26  ;;  %2398 = vmatprep.subr.mxu0 %v2634_v0 }
0x2985   :  { %2399 = vmatpush3.msra.mxu0 %v1963_v37  ;;  %p2610_p4 = por %p2609_p3, %p2608_p2 }
0x2986   :  { %2400 = vmatprep.subr.mxu0 %v2634_v0 }
0x2987   :  { %2401 = vmatpush3.msra.mxu0 %v1962_v38  ;;  %p2611_p5 = pnand %p2610_p4, %p2604_p1 }
0x298f   :  { %v2536_v25 = vpop.eup %2535 }
0x2990   :  { %1947 = vrot.lane.b32.xlu1 %v2536_v25, %s2636_s14 }
0x2991   :  { %v2538_v27 = vpop.eup %2537 }
0x2992   :  { %v1938_v28 = vadd.f32 1.0, %v2538_v27 }
0x2994   :  { %2539 = vrcp.f32 %v1938_v28 }
0x29a1   :  { %v2540_v29 = vpop.eup %2539 }
0x29a2   :  { %v1945_v32 = vmul.f32 %v2540_v29, %v1943_v31 }
0x2a02   :  { %v1948_v30 = vpop.permute.xlu1 %1947 }
0x2a03   :  { %v1950_v13 = vmul.f32 %v2540_v29, %v1948_v30 }
0x2a05   :  { %1952 = vrot.lane.b32.xlu0 %v1950_v13, %s2637_s3 }
0x2a77   :  { %v1953_v33 = vpop.permute.xlu0 %1952 }
0x2a78   :  { %v1955_v35 = vadd.f32 %v1953_v33, %v1945_v32 }
0x2a7a   :  { %2541 = vtanh.f32 %v1955_v35 }
0x2a87   :  { %v2542_v39 = vpop.eup %2541 }
0x2a88   :  { %1958 = vrot.lane.b32.xlu1 %v2542_v39, %s2636_s14 }
0x2afa   :  { %v1959_v40 = vpop.permute.xlu1 %1958 }
0x2afb   :  { %v1961_v41 = vmul.f32 %v2540_v29, %v1959_v40 }
0x2afd   :  { %v1974_v42 = vrot.slane %v1961_v41, 6 }
0x2aff   :  { %1975 = vrot.lane.b32.xlu0 %v1974_v42, %s2637_s3 }
0x2b71   :  { %v1976_v43 = vpop.permute.xlu0 %1975 }
0x2b72   :  { %2403 = vmatmul.mubr.msk.f32.vlgmr.msra.gmra.mxu0 %vm171_vm2, %v1976_v43 }
0x2c32   :  { %v2045_v45 = vpop.f32.mrf.mxu0 }
0x2c33   :  { %v2046_v0 = vadd.f32 %v2103_v44, %v2045_v45 }
0x2c34   :  { %v2404_v52 = vpop.f32.mrf.mxu0 }
0x2c35   :  { %2050 = vst.msk [vmem:[#allocation8] sm:$0x3] %vm2049_vm6, %v2046_v0 }
0x2c36   :  { %2614 = shalt.err (!%p2611_p5)
}
0x2c37   :  { %2060 = dma.vmem_to_hbm [thread:$0]  %s2058_s1, 32, %s3059_s9, [#allocation4]  }
0x2c38   :  { %2627 = dma.done.wait [#allocation4], 32  }
0x2c39   :  { %2628 = vsyncadd [#allocation4], 4294967264 }
0x2c3a   :  { %2064 = vsyncpa [#allocation3], 1 }
0x2c3b   :  { %2065 = vsyncpa [#allocation6], 1 }
0x2c3c   :  { %2066 = vsyncpa [#allocation4], 1 }

</bundles_post_ra>
